<compile_context>
chip_gen: v7x
topology: tpu7x:2x2x1
jax: 0.10.0
libtpu: 0.0.40
codegen_flags: <defaults>
</compile_context>

<pallas_src>
import functools

import jax
import jax.numpy as jnp
from jax import lax
from jax.experimental import pallas as pl
from jax.experimental.pallas import tpu as pltpu


def _round_up(x, m):
    return ((x + m - 1) // m) * m


# ---------------------------------------------------------------------------
# Kernel: one block of K GRU decode steps per grid iteration.
# ---------------------------------------------------------------------------
def gru_decode_block_kernel(tok_ref,       # (K, 1)    i32   token ids of this block
                            h0_ref,        # (1, Hp)   f32   initial hidden (resident)
                            emb_ref,       # (Vp, Hp)  bf16  embedding table (resident)
                            wih_ref,       # (Hp, 3Hp) bf16  fused [r|z|n] input weights
                            bih_ref,       # (1, 3Hp)  f32   fused bias (b_i* + b_h{r,z})
                            whh_ref,       # (Hp, 3Hp) bf16  fused [r|z|n] hidden weights
                            bhn_ref,       # (1, Hp)   f32   b_hn (stays inside r*(...))
                            wout_ref,      # (Hp, Wp)  bf16  output projection
                            bout_ref,      # (1, Wp)   f32
                            logits_ref,    # (K, Wp)   f32   per-block logits
                            hout_ref,      # (1, Hp)   f32   final hidden (resident)
                            h_scr,         # (1, Hp)   f32   hidden carry across blocks
                            hrow_scr,      # (K, Hp)   f32   per-step hidden rows
                            *, t_real):
    blk = pl.program_id(0)
    K = tok_ref.shape[0]
    Hp = h0_ref.shape[-1]
    Vp = emb_ref.shape[0]

    @pl.when(blk == 0)
    def _():
        h_scr[...] = h0_ref[...]

    # ---- Phase 1 (hoisted): embedding gather via one-hot matmul + all input-side
    # gate activations for the block in a single M=K matmul. ------------------------
    toks = tok_ref[...]                                                   # (K, 1) i32
    onehot = (lax.broadcasted_iota(jnp.int32, (K, Vp), 1) == toks).astype(jnp.bfloat16)
    x = jnp.dot(onehot, emb_ref[...],
                preferred_element_type=jnp.float32).astype(jnp.bfloat16)  # (K, Hp)
    gi_all = jnp.dot(x, wih_ref[...],
                     preferred_element_type=jnp.float32) + bih_ref[...]   # (K, 3Hp)

    # ---- Phase 2: serial recurrence; only h @ W_hh sits on the carried chain. -----
    h = h_scr[...]                                                        # (1, Hp) f32
    b_hn = bhn_ref[...]
    for i in range(K):                                                    # K static -> unrolled
        gh = jnp.dot(h.astype(jnp.bfloat16), whh_ref[...],
                     preferred_element_type=jnp.float32)                  # (1, 3Hp)
        gi = gi_all[i:i + 1, :]
        # PyTorch GRU gate order (r, z, n); elementwise math stays f32 (v5e has no
        # bf16 VPU/EUP path).
        r = jax.nn.sigmoid(gi[:, 0 * Hp:1 * Hp] + gh[:, 0 * Hp:1 * Hp])
        z = jax.nn.sigmoid(gi[:, 1 * Hp:2 * Hp] + gh[:, 1 * Hp:2 * Hp])
        n = jnp.tanh(gi[:, 2 * Hp:3 * Hp] + r * (gh[:, 2 * Hp:3 * Hp] + b_hn))
        h = (1.0 - z) * n + z * h
        hrow_scr[i:i + 1, :] = h

        # Write the final hidden exactly once, at the true last step; padded steps
        # after it may keep mutating h but nothing downstream consumes them.
        @pl.when(blk * K + i == t_real - 1)
        def _(h=h):
            hout_ref[...] = h

    h_scr[...] = h                                                        # carry to next block

    # ---- Phase 3 (deferred): one M=K vocab projection for the whole block. --------
    logits_ref[...] = (jnp.dot(hrow_scr[...].astype(jnp.bfloat16), wout_ref[...],
                               preferred_element_type=jnp.float32) + bout_ref[...])


# ---------------------------------------------------------------------------
# One-time host-side parameter packing (fuse gates, fold biases, pad, bf16).
# ---------------------------------------------------------------------------
def prepare_params(params):
    H = params["hidden_size"]
    W = params["word_size"]
    Hp = _round_up(H, 128)
    Wp = _round_up(W, 128)
    Vp = _round_up(W, 128)     # vocab rows of the resident embedding table

    emb = jnp.zeros((Vp, Hp), jnp.float32).at[:W, :H].set(params["embedding"])

    def pack_gates(w):                      # (3H, H) stacked [r|z|n] -> (Hp, 3Hp), x @ W layout
        wt = w.T                            # (H, 3H)
        wp = jnp.zeros((Hp, 3 * Hp), jnp.float32)
        for k in range(3):
            wp = wp.at[:H, k * Hp:k * Hp + H].set(wt[:, k * H:(k + 1) * H])
        return wp.astype(jnp.bfloat16)

    b_ih, b_hh = params["gru_b_ih"], params["gru_b_hh"]
    # Fused input-side bias: [b_ir + b_hr | b_iz + b_hz | b_in]; b_hn kept separate
    # because PyTorch applies it inside r * (W_hn h + b_hn).
    b_fused = jnp.zeros((1, 3 * Hp), jnp.float32)
    b_fused = b_fused.at[0, 0 * Hp:0 * Hp + H].set(b_ih[0 * H:1 * H] + b_hh[0 * H:1 * H])
    b_fused = b_fused.at[0, 1 * Hp:1 * Hp + H].set(b_ih[1 * H:2 * H] + b_hh[1 * H:2 * H])
    b_fused = b_fused.at[0, 2 * Hp:2 * Hp + H].set(b_ih[2 * H:3 * H])
    b_hn = jnp.zeros((1, Hp), jnp.float32).at[0, :H].set(b_hh[2 * H:3 * H])

    w_out = jnp.zeros((Hp, Wp), jnp.float32).at[:H, :W].set(params["out_w"].T)
    b_out = jnp.zeros((1, Wp), jnp.float32).at[0, :W].set(params["out_b"])

    return {
        "H": H, "W": W, "Hp": Hp, "Wp": Wp, "Vp": Vp,
        "emb": emb.astype(jnp.bfloat16),
        "w_ih": pack_gates(params["gru_w_ih"]), "b_fused": b_fused,
        "w_hh": pack_gates(params["gru_w_hh"]), "b_hn": b_hn,
        "w_out": w_out.astype(jnp.bfloat16), "b_out": b_out,
    }


# ---------------------------------------------------------------------------
# Fused multi-step decode: T sequential DecoderRNN.forward steps, one pallas_call.
# ---------------------------------------------------------------------------
def decoder_decode(tokens, hidden, prepped, *, steps_per_block=8):
    """tokens: int (T,); hidden: (1, 1, H) f32 -> (logits (T, W) f32, hidden (1, 1, H) f32)."""
    H, W = prepped["H"], prepped["W"]
    Hp, Wp, Vp = prepped["Hp"], prepped["Wp"], prepped["Vp"]
    tokens = tokens.astype(jnp.int32).reshape(-1)
    T = int(tokens.shape[0])
    K = int(steps_per_block)
    Tp = _round_up(T, K)
    nblk = Tp // K

    tok_pad = jnp.zeros((Tp, 1), jnp.int32).at[:T, 0].set(tokens)
    h_pad = jnp.zeros((1, Hp), jnp.float32).at[:, :H].set(hidden.reshape(1, H))

    grid_spec = pltpu.PrefetchScalarGridSpec(
        num_scalar_prefetch=0,
        grid=(nblk,),
        in_specs=[
            pl.BlockSpec((K, 1), lambda b: (b, 0)),            # token ids for this block
            pl.BlockSpec((1, Hp), lambda b: (0, 0)),           # h0            (resident)
            pl.BlockSpec((Vp, Hp), lambda b: (0, 0)),          # embedding     (resident)
            pl.BlockSpec((Hp, 3 * Hp), lambda b: (0, 0)),      # W_ih fused    (resident)
            pl.BlockSpec((1, 3 * Hp), lambda b: (0, 0)),       # fused bias
            pl.BlockSpec((Hp, 3 * Hp), lambda b: (0, 0)),      # W_hh fused    (resident)
            pl.BlockSpec((1, Hp), lambda b: (0, 0)),           # b_hn
            pl.BlockSpec((Hp, Wp), lambda b: (0, 0)),          # W_out         (resident)
            pl.BlockSpec((1, Wp), lambda b: (0, 0)),           # b_out
        ],
        out_specs=[
            pl.BlockSpec((K, Wp), lambda b: (b, 0)),           # per-block logits (lane-dense)
            pl.BlockSpec((1, Hp), lambda b: (0, 0)),           # final hidden  (resident)
        ],
        scratch_shapes=[pltpu.VMEM((1, Hp), jnp.float32),      # hidden carry
                        pltpu.VMEM((K, Hp), jnp.float32)],     # per-step hidden rows
    )

    # Resident working set -> explicit VMEM limit (matters once H / vocab scale up).
    resident = ((Vp * Hp + 2 * Hp * 3 * Hp + Hp * Wp) * 2            # bf16 weights
                + (3 * Hp + Hp + Wp + Hp) * 4)                       # f32 biases + h0
    block_io = 2 * (K * 4 + K * Wp * 4 + Hp * 4)                     # double-buffered block IO
    vmem_limit = int(min(128 << 20, max(16 << 20, 2 * resident + block_io + (4 << 20))))

    flops_blk = (2 * K * Vp * Hp + 2 * K * Hp * 3 * Hp
                 + K * 2 * Hp * 3 * Hp + 2 * K * Hp * Wp)
    cost = pl.CostEstimate(flops=nblk * flops_blk,
                           transcendentals=nblk * K * 3 * Hp,
                           bytes_accessed=resident + Tp * (4 + 4 * Wp) + 4 * Hp)

    kernel = functools.partial(gru_decode_block_kernel, t_real=T)

    # TODO(synk): for production-scale vocab, tile W_out over a vocab grid axis (parallel
    # across v7x's 2 TCs) and quantize it (int8 on v6e / fp8 on v7x); batching B>=8
    # sequences would further fill MXU rows, but the module itself is batch-1.
    logits_p, h_final_p = pl.pallas_call(
        kernel,
        out_shape=(jax.ShapeDtypeStruct((Tp, Wp), jnp.float32),
                   jax.ShapeDtypeStruct((1, Hp), jnp.float32)),
        grid_spec=grid_spec,
        compiler_params=pltpu.CompilerParams(
            dimension_semantics=("arbitrary",),                 # serial carry through h_scr
            vmem_limit_bytes=vmem_limit),
        cost_estimate=cost,
    )(tok_pad, h_pad, prepped["emb"], prepped["w_ih"], prepped["b_fused"],
      prepped["w_hh"], prepped["b_hn"], prepped["w_out"], prepped["b_out"])

    return logits_p[:T, :W], h_final_p[:, :H].reshape(1, 1, H)


def decoder_forward(token, hidden, prepped):
    """DecoderRNN.forward: single GRU step + output projection."""
    return decoder_decode(token.reshape(1), hidden, prepped)


# ---------------------------------------------------------------------------
# Plain-JAX glue + reference + params.
# ---------------------------------------------------------------------------
def init_hidden(z, c, params):
    """initHidden: latent_to_hidden(cat(z, c, dim=2))."""
    latent = jnp.concatenate([z, c], axis=2)                         # (1, 1, L+C)
    return latent @ params["l2h_w"].T + params["l2h_b"]              # (1, 1, H)


def reference_forward(token, hidden, params):
    """Pure-JAX replica of the PyTorch forward (f32), for verification."""
    H = params["hidden_size"]
    x = params["embedding"][token[0]].reshape(1, H)
    h = hidden.reshape(1, H)
    gi = x @ params["gru_w_ih"].T + params["gru_b_ih"]
    gh = h @ params["gru_w_hh"].T + params["gru_b_hh"]
    i_r, i_z, i_n = gi[:, :H], gi[:, H:2 * H], gi[:, 2 * H:]
    h_r, h_z, h_n = gh[:, :H], gh[:, H:2 * H], gh[:, 2 * H:]
    r = jax.nn.sigmoid(i_r + h_r)
    z = jax.nn.sigmoid(i_z + h_z)
    n = jnp.tanh(i_n + r * h_n)
    h_new = (1.0 - z) * n + z * h
    logits = h_new @ params["out_w"].T + params["out_b"]
    return logits, h_new.reshape(1, 1, H)


def make_params(key, word_size, hidden_size, latent_size, condition_size):
    ks = jax.random.split(key, 8)
    s = 0.1
    return {
        "word_size": word_size,
        "hidden_size": hidden_size,
        "l2h_w": s * jax.random.normal(ks[0], (hidden_size, latent_size + condition_size), jnp.float32),
        "l2h_b": s * jax.random.normal(ks[1], (hidden_size,), jnp.float32),
        "embedding": s * jax.random.normal(ks[2], (word_size, hidden_size), jnp.float32),
        "gru_w_ih": s * jax.random.normal(ks[3], (3 * hidden_size, hidden_size), jnp.float32),
        "gru_w_hh": s * jax.random.normal(ks[4], (3 * hidden_size, hidden_size), jnp.float32),
        "gru_b_ih": s * jax.random.normal(ks[5], (3 * hidden_size,), jnp.float32),
        "gru_b_hh": s * jax.random.normal(ks[6], (3 * hidden_size,), jnp.float32),
        "out_w": s * jax.random.normal(ks[7], (word_size, hidden_size), jnp.float32),
        "out_b": jnp.zeros((word_size,), jnp.float32),
    }


if __name__ == "__main__":
    word_size, hidden_size, latent_size, condition_size = 64, 32, 16, 8

    key = jax.random.PRNGKey(0)
    pkey, zkey, ckey, tkey = jax.random.split(key, 4)
    params = make_params(pkey, word_size, hidden_size, latent_size, condition_size)
    prepped = prepare_params(params)        # one-time packing (fused gates, padded, bf16)

    z = jax.random.normal(zkey, (1, 1, latent_size), jnp.float32)
    c = jax.random.normal(ckey, (1, 1, condition_size), jnp.float32)
    hidden = init_hidden(z, c, params)                               # (1, 1, H)

    # --- single step (== DecoderRNN.forward) -------------------------------
    token = jnp.array([5], dtype=jnp.int32)
    logits, h_new = decoder_forward(token, hidden, prepped)
    jax.block_until_ready((logits, h_new))

    ref_logits, ref_h = reference_forward(token, hidden, params)
    assert logits.shape == (1, word_size) and h_new.shape == (1, 1, hidden_size)
    assert jnp.allclose(logits, ref_logits, atol=3e-2, rtol=3e-2)    # bf16 weights
    assert jnp.allclose(h_new, ref_h, atol=3e-2, rtol=3e-2)

    # --- fused multi-step decode (== T sequential forward calls) -----------
    # T=11 exercises: multiple blocks (K=8), the cross-block hidden carry, and padding.
    T = 11
    tokens = jax.random.randint(tkey, (T,), 0, word_size, dtype=jnp.int32)
    seq_logits, h_final = decoder_decode(tokens, hidden, prepped)
    jax.block_until_ready((seq_logits, h_final))

    rh = hidden
    ref_rows = []
    for t in range(T):
        rl, rh = reference_forward(tokens[t:t + 1], rh, params)
        ref_rows.append(rl)
    ref_seq = jnp.concatenate(ref_rows, axis=0)
    assert seq_logits.shape == (T, word_size) and h_final.shape == (1, 1, hidden_size)
    assert jnp.allclose(seq_logits, ref_seq, atol=5e-2, rtol=5e-2)
    assert jnp.allclose(h_final, rh, atol=5e-2, rtol=5e-2)

    print("KERNEL_OK")
</pallas_src>

<mosaic_0001>
module attributes {stable_mosaic.version = 11 : i64} {
  func.func @gru_decode_block_kernel(%arg0: i32, %arg1: memref<8x1xi32, #tpu.memory_space<vmem>>, %arg2: memref<1x128xf32, #tpu.memory_space<vmem>>, %arg3: memref<128x128xbf16, #tpu.memory_space<vmem>>, %arg4: memref<128x384xbf16, #tpu.memory_space<vmem>>, %arg5: memref<1x384xf32, #tpu.memory_space<vmem>>, %arg6: memref<128x384xbf16, #tpu.memory_space<vmem>>, %arg7: memref<1x128xf32, #tpu.memory_space<vmem>>, %arg8: memref<128x128xbf16, #tpu.memory_space<vmem>>, %arg9: memref<1x128xf32, #tpu.memory_space<vmem>>, %arg10: memref<8x128xf32, #tpu.memory_space<vmem>>, %arg11: memref<1x128xf32, #tpu.memory_space<vmem>>, %arg12: memref<1x128xf32, #tpu.memory_space<vmem>>, %arg13: memref<8x128xf32, #tpu.memory_space<vmem>>) attributes {dimension_semantics = [#tpu.dimension_semantics<arbitrary>], iteration_bounds = array<i64: 1>, scalar_prefetch = 0 : i64, scratch_operands = 2 : i64, tpu.core_type = #tpu.core_type<tc>, window_params = [{transform_indices = @transform_0, window_bounds = array<i64: 8, 1>}, {pipeline_mode = #tpu.pipeline_mode<synchronous>, transform_indices = @transform_1, window_bounds = array<i64: 1, 128>}, {pipeline_mode = #tpu.pipeline_mode<synchronous>, transform_indices = @transform_2, window_bounds = array<i64: 128, 128>}, {pipeline_mode = #tpu.pipeline_mode<synchronous>, transform_indices = @transform_3, window_bounds = array<i64: 128, 384>}, {pipeline_mode = #tpu.pipeline_mode<synchronous>, transform_indices = @transform_4, window_bounds = array<i64: 1, 384>}, {pipeline_mode = #tpu.pipeline_mode<synchronous>, transform_indices = @transform_5, window_bounds = array<i64: 128, 384>}, {pipeline_mode = #tpu.pipeline_mode<synchronous>, transform_indices = @transform_6, window_bounds = array<i64: 1, 128>}, {pipeline_mode = #tpu.pipeline_mode<synchronous>, transform_indices = @transform_7, window_bounds = array<i64: 128, 128>}, {pipeline_mode = #tpu.pipeline_mode<synchronous>, transform_indices = @transform_8, window_bounds = array<i64: 1, 128>}, {transform_indices = @transform_9, window_bounds = array<i64: 8, 128>}, {pipeline_mode = #tpu.pipeline_mode<synchronous>, transform_indices = @transform_10, window_bounds = array<i64: 1, 128>}]} {
    %c0_i32 = arith.constant 0 : i32
    %0 = arith.cmpi eq, %arg0, %c0_i32 : i32
    %1 = arith.extui %0 : i1 to i32
    %c0_i32_0 = arith.constant 0 : i32
    %2 = arith.cmpi ne, %1, %c0_i32_0 : i32
    scf.if %2 {
      %c0_105 = arith.constant 0 : index
      %c0_106 = arith.constant 0 : index
      %325 = vector.load %arg2[%c0_105, %c0_106] : memref<1x128xf32, #tpu.memory_space<vmem>>, vector<1x128xf32>
      %c0_107 = arith.constant 0 : index
      %c0_108 = arith.constant 0 : index
      %326 = vector.load %arg12[%c0_107, %c0_108] : memref<1x128xf32, #tpu.memory_space<vmem>>, vector<1x128xf32>
      tpu.vector_store %arg12[%c0_107, %c0_108], %325 {strides = array<i32>} : memref<1x128xf32, #tpu.memory_space<vmem>>, vector<1x128xf32>,
    } else {
    }
    %c0 = arith.constant 0 : index
    %c0_1 = arith.constant 0 : index
    %3 = vector.load %arg1[%c0, %c0_1] : memref<8x1xi32, #tpu.memory_space<vmem>>, vector<8x1xi32>
    %4 = tpu.iota {dimensions = array<i32: 1>} : vector<8x128xi32>
    %5 = vector.broadcast %3 : vector<8x1xi32> to vector<8x128xi32>
    %6 = arith.cmpi eq, %4, %5 : vector<8x128xi32>
    %7 = arith.extui %6 : vector<8x128xi1> to vector<8x128xi32>
    %8 = arith.sitofp %7 : vector<8x128xi32> to vector<8x128xf32>
    %9 = arith.truncf %8 : vector<8x128xf32> to vector<8x128xbf16>
    %c0_2 = arith.constant 0 : index
    %c0_3 = arith.constant 0 : index
    %10 = vector.load %arg3[%c0_2, %c0_3] : memref<128x128xbf16, #tpu.memory_space<vmem>>, vector<128x128xbf16>
    %cst = arith.constant dense<0.000000e+00> : vector<8x128xf32>
    %11 = tpu.matmul %9, %10, %cst {dimension_numbers = #tpu.dot_dimension_numbers<[1], [0], [0], [1], [0, 0, 1, 1], [], []>} : vector<8x128xbf16>, vector<128x128xbf16>, vector<8x128xf32> -> vector<8x128xf32>
    %12 = arith.truncf %11 : vector<8x128xf32> to vector<8x128xbf16>
    %c0_4 = arith.constant 0 : index
    %c0_5 = arith.constant 0 : index
    %13 = vector.load %arg4[%c0_4, %c0_5] : memref<128x384xbf16, #tpu.memory_space<vmem>>, vector<128x384xbf16>
    %cst_6 = arith.constant dense<0.000000e+00> : vector<8x384xf32>
    %14 = tpu.matmul %12, %13, %cst_6 {dimension_numbers = #tpu.dot_dimension_numbers<[1], [0], [0], [1], [0, 0, 1, 1], [], []>} : vector<8x128xbf16>, vector<128x384xbf16>, vector<8x384xf32> -> vector<8x384xf32>
    %c0_7 = arith.constant 0 : index
    %c0_8 = arith.constant 0 : index
    %15 = vector.load %arg5[%c0_7, %c0_8] : memref<1x384xf32, #tpu.memory_space<vmem>>, vector<1x384xf32>
    %16 = vector.broadcast %15 : vector<1x384xf32> to vector<8x384xf32>
    %17 = arith.addf %14, %16 : vector<8x384xf32>
    %c0_9 = arith.constant 0 : index
    %c0_10 = arith.constant 0 : index
    %18 = vector.load %arg12[%c0_9, %c0_10] : memref<1x128xf32, #tpu.memory_space<vmem>>, vector<1x128xf32>
    %c0_11 = arith.constant 0 : index
    %c0_12 = arith.constant 0 : index
    %19 = vector.load %arg7[%c0_11, %c0_12] : memref<1x128xf32, #tpu.memory_space<vmem>>, vector<1x128xf32>
    %20 = arith.truncf %18 : vector<1x128xf32> to vector<1x128xbf16>
    %c0_13 = arith.constant 0 : index
    %c0_14 = arith.constant 0 : index
    %21 = vector.load %arg6[%c0_13, %c0_14] : memref<128x384xbf16, #tpu.memory_space<vmem>>, vector<128x384xbf16>
    %cst_15 = arith.constant dense<0.000000e+00> : vector<1x384xf32>
    %22 = tpu.matmul %20, %21, %cst_15 {dimension_numbers = #tpu.dot_dimension_numbers<[1], [0], [0], [1], [0, 0, 1, 1], [], []>} : vector<1x128xbf16>, vector<128x384xbf16>, vector<1x384xf32> -> vector<1x384xf32>
    %23 = vector.extract_strided_slice %17 {offsets = [0, 0], sizes = [1, 384], strides = [1, 1]} : vector<8x384xf32> to vector<1x384xf32>
    %24 = vector.extract_strided_slice %23 {offsets = [0, 0], sizes = [1, 128], strides = [1, 1]} : vector<1x384xf32> to vector<1x128xf32>
    %25 = vector.extract_strided_slice %22 {offsets = [0, 0], sizes = [1, 128], strides = [1, 1]} : vector<1x384xf32> to vector<1x128xf32>
    %26 = arith.addf %24, %25 : vector<1x128xf32>
    %27 = arith.negf %26 : vector<1x128xf32>
    %28 = math.exp %27 : vector<1x128xf32>
    %cst_16 = arith.constant 1.000000e+00 : f32
    %29 = vector.broadcast %cst_16 : f32 to vector<1x128xf32>
    %30 = arith.addf %29, %28 : vector<1x128xf32>
    %31 = arith.divf %29, %30 : vector<1x128xf32>
    %32 = vector.extract_strided_slice %23 {offsets = [0, 128], sizes = [1, 128], strides = [1, 1]} : vector<1x384xf32> to vector<1x128xf32>
    %33 = vector.extract_strided_slice %22 {offsets = [0, 128], sizes = [1, 128], strides = [1, 1]} : vector<1x384xf32> to vector<1x128xf32>
    %34 = arith.addf %32, %33 : vector<1x128xf32>
    %35 = arith.negf %34 : vector<1x128xf32>
    %36 = math.exp %35 : vector<1x128xf32>
    %cst_17 = arith.constant 1.000000e+00 : f32
    %37 = vector.broadcast %cst_17 : f32 to vector<1x128xf32>
    %38 = arith.addf %37, %36 : vector<1x128xf32>
    %39 = arith.divf %37, %38 : vector<1x128xf32>
    %40 = vector.extract_strided_slice %23 {offsets = [0, 256], sizes = [1, 128], strides = [1, 1]} : vector<1x384xf32> to vector<1x128xf32>
    %41 = vector.extract_strided_slice %22 {offsets = [0, 256], sizes = [1, 128], strides = [1, 1]} : vector<1x384xf32> to vector<1x128xf32>
    %42 = arith.addf %41, %19 : vector<1x128xf32>
    %43 = arith.mulf %31, %42 : vector<1x128xf32>
    %44 = arith.addf %40, %43 : vector<1x128xf32>
    %45 = math.tanh %44 : vector<1x128xf32>
    %cst_18 = arith.constant 1.000000e+00 : f32
    %46 = vector.broadcast %cst_18 : f32 to vector<1x128xf32>
    %47 = arith.subf %46, %39 : vector<1x128xf32>
    %48 = arith.mulf %47, %45 : vector<1x128xf32>
    %49 = arith.mulf %39, %18 : vector<1x128xf32>
    %50 = arith.addf %48, %49 : vector<1x128xf32>
    %c0_19 = arith.constant 0 : index
    %c0_20 = arith.constant 0 : index
    %51 = vector.load %arg13[%c0_19, %c0_20] : memref<8x128xf32, #tpu.memory_space<vmem>>, vector<1x128xf32>
    tpu.vector_store %arg13[%c0_19, %c0_20], %50 {strides = array<i32>} : memref<8x128xf32, #tpu.memory_space<vmem>>, vector<1x128xf32>,
    %c8_i32 = arith.constant 8 : i32
    %52 = arith.muli %arg0, %c8_i32 : i32
    %c0_i32_21 = arith.constant 0 : i32
    %53 = arith.addi %52, %c0_i32_21 : i32
    %c0_i32_22 = arith.constant 0 : i32
    %54 = arith.cmpi eq, %53, %c0_i32_22 : i32
    %55 = arith.extui %54 : i1 to i32
    %c0_i32_23 = arith.constant 0 : i32
    %56 = arith.cmpi ne, %55, %c0_i32_23 : i32
    scf.if %56 {
      %c0_105 = arith.constant 0 : index
      %c0_106 = arith.constant 0 : index
      %325 = vector.load %arg11[%c0_105, %c0_106] : memref<1x128xf32, #tpu.memory_space<vmem>>, vector<1x128xf32>
      tpu.vector_store %arg11[%c0_105, %c0_106], %50 {strides = array<i32>} : memref<1x128xf32, #tpu.memory_space<vmem>>, vector<1x128xf32>,
    } else {
    }
    %57 = arith.truncf %50 : vector<1x128xf32> to vector<1x128xbf16>
    %c0_24 = arith.constant 0 : index
    %c0_25 = arith.constant 0 : index
    %58 = vector.load %arg6[%c0_24, %c0_25] : memref<128x384xbf16, #tpu.memory_space<vmem>>, vector<128x384xbf16>
    %cst_26 = arith.constant dense<0.000000e+00> : vector<1x384xf32>
    %59 = tpu.matmul %57, %58, %cst_26 {dimension_numbers = #tpu.dot_dimension_numbers<[1], [0], [0], [1], [0, 0, 1, 1], [], []>} : vector<1x128xbf16>, vector<128x384xbf16>, vector<1x384xf32> -> vector<1x384xf32>
    %60 = vector.extract_strided_slice %17 {offsets = [1, 0], sizes = [1, 384], strides = [1, 1]} : vector<8x384xf32> to vector<1x384xf32>
    %61 = vector.extract_strided_slice %60 {offsets = [0, 0], sizes = [1, 128], strides = [1, 1]} : vector<1x384xf32> to vector<1x128xf32>
    %62 = vector.extract_strided_slice %59 {offsets = [0, 0], sizes = [1, 128], strides = [1, 1]} : vector<1x384xf32> to vector<1x128xf32>
    %63 = arith.addf %61, %62 : vector<1x128xf32>
    %64 = arith.negf %63 : vector<1x128xf32>
    %65 = math.exp %64 : vector<1x128xf32>
    %cst_27 = arith.constant 1.000000e+00 : f32
    %66 = vector.broadcast %cst_27 : f32 to vector<1x128xf32>
    %67 = arith.addf %66, %65 : vector<1x128xf32>
    %68 = arith.divf %66, %67 : vector<1x128xf32>
    %69 = vector.extract_strided_slice %60 {offsets = [0, 128], sizes = [1, 128], strides = [1, 1]} : vector<1x384xf32> to vector<1x128xf32>
    %70 = vector.extract_strided_slice %59 {offsets = [0, 128], sizes = [1, 128], strides = [1, 1]} : vector<1x384xf32> to vector<1x128xf32>
    %71 = arith.addf %69, %70 : vector<1x128xf32>
    %72 = arith.negf %71 : vector<1x128xf32>
    %73 = math.exp %72 : vector<1x128xf32>
    %cst_28 = arith.constant 1.000000e+00 : f32
    %74 = vector.broadcast %cst_28 : f32 to vector<1x128xf32>
    %75 = arith.addf %74, %73 : vector<1x128xf32>
    %76 = arith.divf %74, %75 : vector<1x128xf32>
    %77 = vector.extract_strided_slice %60 {offsets = [0, 256], sizes = [1, 128], strides = [1, 1]} : vector<1x384xf32> to vector<1x128xf32>
    %78 = vector.extract_strided_slice %59 {offsets = [0, 256], sizes = [1, 128], strides = [1, 1]} : vector<1x384xf32> to vector<1x128xf32>
    %79 = arith.addf %78, %19 : vector<1x128xf32>
    %80 = arith.mulf %68, %79 : vector<1x128xf32>
    %81 = arith.addf %77, %80 : vector<1x128xf32>
    %82 = math.tanh %81 : vector<1x128xf32>
    %cst_29 = arith.constant 1.000000e+00 : f32
    %83 = vector.broadcast %cst_29 : f32 to vector<1x128xf32>
    %84 = arith.subf %83, %76 : vector<1x128xf32>
    %85 = arith.mulf %84, %82 : vector<1x128xf32>
    %86 = arith.mulf %76, %50 : vector<1x128xf32>
    %87 = arith.addf %85, %86 : vector<1x128xf32>
    %c1 = arith.constant 1 : index
    %c0_30 = arith.constant 0 : index
    %88 = vector.load %arg13[%c1, %c0_30] : memref<8x128xf32, #tpu.memory_space<vmem>>, vector<1x128xf32>
    tpu.vector_store %arg13[%c1, %c0_30], %87 {strides = array<i32>} : memref<8x128xf32, #tpu.memory_space<vmem>>, vector<1x128xf32>,
    %c8_i32_31 = arith.constant 8 : i32
    %89 = arith.muli %arg0, %c8_i32_31 : i32
    %c1_i32 = arith.constant 1 : i32
    %90 = arith.addi %89, %c1_i32 : i32
    %c0_i32_32 = arith.constant 0 : i32
    %91 = arith.cmpi eq, %90, %c0_i32_32 : i32
    %92 = arith.extui %91 : i1 to i32
    %c0_i32_33 = arith.constant 0 : i32
    %93 = arith.cmpi ne, %92, %c0_i32_33 : i32
    scf.if %93 {
      %c0_105 = arith.constant 0 : index
      %c0_106 = arith.constant 0 : index
      %325 = vector.load %arg11[%c0_105, %c0_106] : memref<1x128xf32, #tpu.memory_space<vmem>>, vector<1x128xf32>
      tpu.vector_store %arg11[%c0_105, %c0_106], %87 {strides = array<i32>} : memref<1x128xf32, #tpu.memory_space<vmem>>, vector<1x128xf32>,
    } else {
    }
    %94 = arith.truncf %87 : vector<1x128xf32> to vector<1x128xbf16>
    %c0_34 = arith.constant 0 : index
    %c0_35 = arith.constant 0 : index
    %95 = vector.load %arg6[%c0_34, %c0_35] : memref<128x384xbf16, #tpu.memory_space<vmem>>, vector<128x384xbf16>
    %cst_36 = arith.constant dense<0.000000e+00> : vector<1x384xf32>
    %96 = tpu.matmul %94, %95, %cst_36 {dimension_numbers = #tpu.dot_dimension_numbers<[1], [0], [0], [1], [0, 0, 1, 1], [], []>} : vector<1x128xbf16>, vector<128x384xbf16>, vector<1x384xf32> -> vector<1x384xf32>
    %97 = vector.extract_strided_slice %17 {offsets = [2, 0], sizes = [1, 384], strides = [1, 1]} : vector<8x384xf32> to vector<1x384xf32>
    %98 = vector.extract_strided_slice %97 {offsets = [0, 0], sizes = [1, 128], strides = [1, 1]} : vector<1x384xf32> to vector<1x128xf32>
    %99 = vector.extract_strided_slice %96 {offsets = [0, 0], sizes = [1, 128], strides = [1, 1]} : vector<1x384xf32> to vector<1x128xf32>
    %100 = arith.addf %98, %99 : vector<1x128xf32>
    %101 = arith.negf %100 : vector<1x128xf32>
    %102 = math.exp %101 : vector<1x128xf32>
    %cst_37 = arith.constant 1.000000e+00 : f32
    %103 = vector.broadcast %cst_37 : f32 to vector<1x128xf32>
    %104 = arith.addf %103, %102 : vector<1x128xf32>
    %105 = arith.divf %103, %104 : vector<1x128xf32>
    %106 = vector.extract_strided_slice %97 {offsets = [0, 128], sizes = [1, 128], strides = [1, 1]} : vector<1x384xf32> to vector<1x128xf32>
    %107 = vector.extract_strided_slice %96 {offsets = [0, 128], sizes = [1, 128], strides = [1, 1]} : vector<1x384xf32> to vector<1x128xf32>
    %108 = arith.addf %106, %107 : vector<1x128xf32>
    %109 = arith.negf %108 : vector<1x128xf32>
    %110 = math.exp %109 : vector<1x128xf32>
    %cst_38 = arith.constant 1.000000e+00 : f32
    %111 = vector.broadcast %cst_38 : f32 to vector<1x128xf32>
    %112 = arith.addf %111, %110 : vector<1x128xf32>
    %113 = arith.divf %111, %112 : vector<1x128xf32>
    %114 = vector.extract_strided_slice %97 {offsets = [0, 256], sizes = [1, 128], strides = [1, 1]} : vector<1x384xf32> to vector<1x128xf32>
    %115 = vector.extract_strided_slice %96 {offsets = [0, 256], sizes = [1, 128], strides = [1, 1]} : vector<1x384xf32> to vector<1x128xf32>
    %116 = arith.addf %115, %19 : vector<1x128xf32>
    %117 = arith.mulf %105, %116 : vector<1x128xf32>
    %118 = arith.addf %114, %117 : vector<1x128xf32>
    %119 = math.tanh %118 : vector<1x128xf32>
    %cst_39 = arith.constant 1.000000e+00 : f32
    %120 = vector.broadcast %cst_39 : f32 to vector<1x128xf32>
    %121 = arith.subf %120, %113 : vector<1x128xf32>
    %122 = arith.mulf %121, %119 : vector<1x128xf32>
    %123 = arith.mulf %113, %87 : vector<1x128xf32>
    %124 = arith.addf %122, %123 : vector<1x128xf32>
    %c2 = arith.constant 2 : index
    %c0_40 = arith.constant 0 : index
    %125 = vector.load %arg13[%c2, %c0_40] : memref<8x128xf32, #tpu.memory_space<vmem>>, vector<1x128xf32>
    tpu.vector_store %arg13[%c2, %c0_40], %124 {strides = array<i32>} : memref<8x128xf32, #tpu.memory_space<vmem>>, vector<1x128xf32>,
    %c8_i32_41 = arith.constant 8 : i32
    %126 = arith.muli %arg0, %c8_i32_41 : i32
    %c2_i32 = arith.constant 2 : i32
    %127 = arith.addi %126, %c2_i32 : i32
    %c0_i32_42 = arith.constant 0 : i32
    %128 = arith.cmpi eq, %127, %c0_i32_42 : i32
    %129 = arith.extui %128 : i1 to i32
    %c0_i32_43 = arith.constant 0 : i32
    %130 = arith.cmpi ne, %129, %c0_i32_43 : i32
    scf.if %130 {
      %c0_105 = arith.constant 0 : index
      %c0_106 = arith.constant 0 : index
      %325 = vector.load %arg11[%c0_105, %c0_106] : memref<1x128xf32, #tpu.memory_space<vmem>>, vector<1x128xf32>
      tpu.vector_store %arg11[%c0_105, %c0_106], %124 {strides = array<i32>} : memref<1x128xf32, #tpu.memory_space<vmem>>, vector<1x128xf32>,
    } else {
    }
    %131 = arith.truncf %124 : vector<1x128xf32> to vector<1x128xbf16>
    %c0_44 = arith.constant 0 : index
    %c0_45 = arith.constant 0 : index
    %132 = vector.load %arg6[%c0_44, %c0_45] : memref<128x384xbf16, #tpu.memory_space<vmem>>, vector<128x384xbf16>
    %cst_46 = arith.constant dense<0.000000e+00> : vector<1x384xf32>
    %133 = tpu.matmul %131, %132, %cst_46 {dimension_numbers = #tpu.dot_dimension_numbers<[1], [0], [0], [1], [0, 0, 1, 1], [], []>} : vector<1x128xbf16>, vector<128x384xbf16>, vector<1x384xf32> -> vector<1x384xf32>
    %134 = vector.extract_strided_slice %17 {offsets = [3, 0], sizes = [1, 384], strides = [1, 1]} : vector<8x384xf32> to vector<1x384xf32>
    %135 = vector.extract_strided_slice %134 {offsets = [0, 0], sizes = [1, 128], strides = [1, 1]} : vector<1x384xf32> to vector<1x128xf32>
    %136 = vector.extract_strided_slice %133 {offsets = [0, 0], sizes = [1, 128], strides = [1, 1]} : vector<1x384xf32> to vector<1x128xf32>
    %137 = arith.addf %135, %136 : vector<1x128xf32>
    %138 = arith.negf %137 : vector<1x128xf32>
    %139 = math.exp %138 : vector<1x128xf32>
    %cst_47 = arith.constant 1.000000e+00 : f32
    %140 = vector.broadcast %cst_47 : f32 to vector<1x128xf32>
    %141 = arith.addf %140, %139 : vector<1x128xf32>
    %142 = arith.divf %140, %141 : vector<1x128xf32>
    %143 = vector.extract_strided_slice %134 {offsets = [0, 128], sizes = [1, 128], strides = [1, 1]} : vector<1x384xf32> to vector<1x128xf32>
    %144 = vector.extract_strided_slice %133 {offsets = [0, 128], sizes = [1, 128], strides = [1, 1]} : vector<1x384xf32> to vector<1x128xf32>
    %145 = arith.addf %143, %144 : vector<1x128xf32>
    %146 = arith.negf %145 : vector<1x128xf32>
    %147 = math.exp %146 : vector<1x128xf32>
    %cst_48 = arith.constant 1.000000e+00 : f32
    %148 = vector.broadcast %cst_48 : f32 to vector<1x128xf32>
    %149 = arith.addf %148, %147 : vector<1x128xf32>
    %150 = arith.divf %148, %149 : vector<1x128xf32>
    %151 = vector.extract_strided_slice %134 {offsets = [0, 256], sizes = [1, 128], strides = [1, 1]} : vector<1x384xf32> to vector<1x128xf32>
    %152 = vector.extract_strided_slice %133 {offsets = [0, 256], sizes = [1, 128], strides = [1, 1]} : vector<1x384xf32> to vector<1x128xf32>
    %153 = arith.addf %152, %19 : vector<1x128xf32>
    %154 = arith.mulf %142, %153 : vector<1x128xf32>
    %155 = arith.addf %151, %154 : vector<1x128xf32>
    %156 = math.tanh %155 : vector<1x128xf32>
    %cst_49 = arith.constant 1.000000e+00 : f32
    %157 = vector.broadcast %cst_49 : f32 to vector<1x128xf32>
    %158 = arith.subf %157, %150 : vector<1x128xf32>
    %159 = arith.mulf %158, %156 : vector<1x128xf32>
    %160 = arith.mulf %150, %124 : vector<1x128xf32>
    %161 = arith.addf %159, %160 : vector<1x128xf32>
    %c3 = arith.constant 3 : index
    %c0_50 = arith.constant 0 : index
    %162 = vector.load %arg13[%c3, %c0_50] : memref<8x128xf32, #tpu.memory_space<vmem>>, vector<1x128xf32>
    tpu.vector_store %arg13[%c3, %c0_50], %161 {strides = array<i32>} : memref<8x128xf32, #tpu.memory_space<vmem>>, vector<1x128xf32>,
    %c8_i32_51 = arith.constant 8 : i32
    %163 = arith.muli %arg0, %c8_i32_51 : i32
    %c3_i32 = arith.constant 3 : i32
    %164 = arith.addi %163, %c3_i32 : i32
    %c0_i32_52 = arith.constant 0 : i32
    %165 = arith.cmpi eq, %164, %c0_i32_52 : i32
    %166 = arith.extui %165 : i1 to i32
    %c0_i32_53 = arith.constant 0 : i32
    %167 = arith.cmpi ne, %166, %c0_i32_53 : i32
    scf.if %167 {
      %c0_105 = arith.constant 0 : index
      %c0_106 = arith.constant 0 : index
      %325 = vector.load %arg11[%c0_105, %c0_106] : memref<1x128xf32, #tpu.memory_space<vmem>>, vector<1x128xf32>
      tpu.vector_store %arg11[%c0_105, %c0_106], %161 {strides = array<i32>} : memref<1x128xf32, #tpu.memory_space<vmem>>, vector<1x128xf32>,
    } else {
    }
    %168 = arith.truncf %161 : vector<1x128xf32> to vector<1x128xbf16>
    %c0_54 = arith.constant 0 : index
    %c0_55 = arith.constant 0 : index
    %169 = vector.load %arg6[%c0_54, %c0_55] : memref<128x384xbf16, #tpu.memory_space<vmem>>, vector<128x384xbf16>
    %cst_56 = arith.constant dense<0.000000e+00> : vector<1x384xf32>
    %170 = tpu.matmul %168, %169, %cst_56 {dimension_numbers = #tpu.dot_dimension_numbers<[1], [0], [0], [1], [0, 0, 1, 1], [], []>} : vector<1x128xbf16>, vector<128x384xbf16>, vector<1x384xf32> -> vector<1x384xf32>
    %171 = vector.extract_strided_slice %17 {offsets = [4, 0], sizes = [1, 384], strides = [1, 1]} : vector<8x384xf32> to vector<1x384xf32>
    %172 = vector.extract_strided_slice %171 {offsets = [0, 0], sizes = [1, 128], strides = [1, 1]} : vector<1x384xf32> to vector<1x128xf32>
    %173 = vector.extract_strided_slice %170 {offsets = [0, 0], sizes = [1, 128], strides = [1, 1]} : vector<1x384xf32> to vector<1x128xf32>
    %174 = arith.addf %172, %173 : vector<1x128xf32>
    %175 = arith.negf %174 : vector<1x128xf32>
    %176 = math.exp %175 : vector<1x128xf32>
    %cst_57 = arith.constant 1.000000e+00 : f32
    %177 = vector.broadcast %cst_57 : f32 to vector<1x128xf32>
    %178 = arith.addf %177, %176 : vector<1x128xf32>
    %179 = arith.divf %177, %178 : vector<1x128xf32>
    %180 = vector.extract_strided_slice %171 {offsets = [0, 128], sizes = [1, 128], strides = [1, 1]} : vector<1x384xf32> to vector<1x128xf32>
    %181 = vector.extract_strided_slice %170 {offsets = [0, 128], sizes = [1, 128], strides = [1, 1]} : vector<1x384xf32> to vector<1x128xf32>
    %182 = arith.addf %180, %181 : vector<1x128xf32>
    %183 = arith.negf %182 : vector<1x128xf32>
    %184 = math.exp %183 : vector<1x128xf32>
    %cst_58 = arith.constant 1.000000e+00 : f32
    %185 = vector.broadcast %cst_58 : f32 to vector<1x128xf32>
    %186 = arith.addf %185, %184 : vector<1x128xf32>
    %187 = arith.divf %185, %186 : vector<1x128xf32>
    %188 = vector.extract_strided_slice %171 {offsets = [0, 256], sizes = [1, 128], strides = [1, 1]} : vector<1x384xf32> to vector<1x128xf32>
    %189 = vector.extract_strided_slice %170 {offsets = [0, 256], sizes = [1, 128], strides = [1, 1]} : vector<1x384xf32> to vector<1x128xf32>
    %190 = arith.addf %189, %19 : vector<1x128xf32>
    %191 = arith.mulf %179, %190 : vector<1x128xf32>
    %192 = arith.addf %188, %191 : vector<1x128xf32>
    %193 = math.tanh %192 : vector<1x128xf32>
    %cst_59 = arith.constant 1.000000e+00 : f32
    %194 = vector.broadcast %cst_59 : f32 to vector<1x128xf32>
    %195 = arith.subf %194, %187 : vector<1x128xf32>
    %196 = arith.mulf %195, %193 : vector<1x128xf32>
    %197 = arith.mulf %187, %161 : vector<1x128xf32>
    %198 = arith.addf %196, %197 : vector<1x128xf32>
    %c4 = arith.constant 4 : index
    %c0_60 = arith.constant 0 : index
    %199 = vector.load %arg13[%c4, %c0_60] : memref<8x128xf32, #tpu.memory_space<vmem>>, vector<1x128xf32>
    tpu.vector_store %arg13[%c4, %c0_60], %198 {strides = array<i32>} : memref<8x128xf32, #tpu.memory_space<vmem>>, vector<1x128xf32>,
    %c8_i32_61 = arith.constant 8 : i32
    %200 = arith.muli %arg0, %c8_i32_61 : i32
    %c4_i32 = arith.constant 4 : i32
    %201 = arith.addi %200, %c4_i32 : i32
    %c0_i32_62 = arith.constant 0 : i32
    %202 = arith.cmpi eq, %201, %c0_i32_62 : i32
    %203 = arith.extui %202 : i1 to i32
    %c0_i32_63 = arith.constant 0 : i32
    %204 = arith.cmpi ne, %203, %c0_i32_63 : i32
    scf.if %204 {
      %c0_105 = arith.constant 0 : index
      %c0_106 = arith.constant 0 : index
      %325 = vector.load %arg11[%c0_105, %c0_106] : memref<1x128xf32, #tpu.memory_space<vmem>>, vector<1x128xf32>
      tpu.vector_store %arg11[%c0_105, %c0_106], %198 {strides = array<i32>} : memref<1x128xf32, #tpu.memory_space<vmem>>, vector<1x128xf32>,
    } else {
    }
    %205 = arith.truncf %198 : vector<1x128xf32> to vector<1x128xbf16>
    %c0_64 = arith.constant 0 : index
    %c0_65 = arith.constant 0 : index
    %206 = vector.load %arg6[%c0_64, %c0_65] : memref<128x384xbf16, #tpu.memory_space<vmem>>, vector<128x384xbf16>
    %cst_66 = arith.constant dense<0.000000e+00> : vector<1x384xf32>
    %207 = tpu.matmul %205, %206, %cst_66 {dimension_numbers = #tpu.dot_dimension_numbers<[1], [0], [0], [1], [0, 0, 1, 1], [], []>} : vector<1x128xbf16>, vector<128x384xbf16>, vector<1x384xf32> -> vector<1x384xf32>
    %208 = vector.extract_strided_slice %17 {offsets = [5, 0], sizes = [1, 384], strides = [1, 1]} : vector<8x384xf32> to vector<1x384xf32>
    %209 = vector.extract_strided_slice %208 {offsets = [0, 0], sizes = [1, 128], strides = [1, 1]} : vector<1x384xf32> to vector<1x128xf32>
    %210 = vector.extract_strided_slice %207 {offsets = [0, 0], sizes = [1, 128], strides = [1, 1]} : vector<1x384xf32> to vector<1x128xf32>
    %211 = arith.addf %209, %210 : vector<1x128xf32>
    %212 = arith.negf %211 : vector<1x128xf32>
    %213 = math.exp %212 : vector<1x128xf32>
    %cst_67 = arith.constant 1.000000e+00 : f32
    %214 = vector.broadcast %cst_67 : f32 to vector<1x128xf32>
    %215 = arith.addf %214, %213 : vector<1x128xf32>
    %216 = arith.divf %214, %215 : vector<1x128xf32>
    %217 = vector.extract_strided_slice %208 {offsets = [0, 128], sizes = [1, 128], strides = [1, 1]} : vector<1x384xf32> to vector<1x128xf32>
    %218 = vector.extract_strided_slice %207 {offsets = [0, 128], sizes = [1, 128], strides = [1, 1]} : vector<1x384xf32> to vector<1x128xf32>
    %219 = arith.addf %217, %218 : vector<1x128xf32>
    %220 = arith.negf %219 : vector<1x128xf32>
    %221 = math.exp %220 : vector<1x128xf32>
    %cst_68 = arith.constant 1.000000e+00 : f32
    %222 = vector.broadcast %cst_68 : f32 to vector<1x128xf32>
    %223 = arith.addf %222, %221 : vector<1x128xf32>
    %224 = arith.divf %222, %223 : vector<1x128xf32>
    %225 = vector.extract_strided_slice %208 {offsets = [0, 256], sizes = [1, 128], strides = [1, 1]} : vector<1x384xf32> to vector<1x128xf32>
    %226 = vector.extract_strided_slice %207 {offsets = [0, 256], sizes = [1, 128], strides = [1, 1]} : vector<1x384xf32> to vector<1x128xf32>
    %227 = arith.addf %226, %19 : vector<1x128xf32>
    %228 = arith.mulf %216, %227 : vector<1x128xf32>
    %229 = arith.addf %225, %228 : vector<1x128xf32>
    %230 = math.tanh %229 : vector<1x128xf32>
    %cst_69 = arith.constant 1.000000e+00 : f32
    %231 = vector.broadcast %cst_69 : f32 to vector<1x128xf32>
    %232 = arith.subf %231, %224 : vector<1x128xf32>
    %233 = arith.mulf %232, %230 : vector<1x128xf32>
    %234 = arith.mulf %224, %198 : vector<1x128xf32>
    %235 = arith.addf %233, %234 : vector<1x128xf32>
    %c5 = arith.constant 5 : index
    %c0_70 = arith.constant 0 : index
    %236 = vector.load %arg13[%c5, %c0_70] : memref<8x128xf32, #tpu.memory_space<vmem>>, vector<1x128xf32>
    tpu.vector_store %arg13[%c5, %c0_70], %235 {strides = array<i32>} : memref<8x128xf32, #tpu.memory_space<vmem>>, vector<1x128xf32>,
    %c8_i32_71 = arith.constant 8 : i32
    %237 = arith.muli %arg0, %c8_i32_71 : i32
    %c5_i32 = arith.constant 5 : i32
    %238 = arith.addi %237, %c5_i32 : i32
    %c0_i32_72 = arith.constant 0 : i32
    %239 = arith.cmpi eq, %238, %c0_i32_72 : i32
    %240 = arith.extui %239 : i1 to i32
    %c0_i32_73 = arith.constant 0 : i32
    %241 = arith.cmpi ne, %240, %c0_i32_73 : i32
    scf.if %241 {
      %c0_105 = arith.constant 0 : index
      %c0_106 = arith.constant 0 : index
      %325 = vector.load %arg11[%c0_105, %c0_106] : memref<1x128xf32, #tpu.memory_space<vmem>>, vector<1x128xf32>
      tpu.vector_store %arg11[%c0_105, %c0_106], %235 {strides = array<i32>} : memref<1x128xf32, #tpu.memory_space<vmem>>, vector<1x128xf32>,
    } else {
    }
    %242 = arith.truncf %235 : vector<1x128xf32> to vector<1x128xbf16>
    %c0_74 = arith.constant 0 : index
    %c0_75 = arith.constant 0 : index
    %243 = vector.load %arg6[%c0_74, %c0_75] : memref<128x384xbf16, #tpu.memory_space<vmem>>, vector<128x384xbf16>
    %cst_76 = arith.constant dense<0.000000e+00> : vector<1x384xf32>
    %244 = tpu.matmul %242, %243, %cst_76 {dimension_numbers = #tpu.dot_dimension_numbers<[1], [0], [0], [1], [0, 0, 1, 1], [], []>} : vector<1x128xbf16>, vector<128x384xbf16>, vector<1x384xf32> -> vector<1x384xf32>
    %245 = vector.extract_strided_slice %17 {offsets = [6, 0], sizes = [1, 384], strides = [1, 1]} : vector<8x384xf32> to vector<1x384xf32>
    %246 = vector.extract_strided_slice %245 {offsets = [0, 0], sizes = [1, 128], strides = [1, 1]} : vector<1x384xf32> to vector<1x128xf32>
    %247 = vector.extract_strided_slice %244 {offsets = [0, 0], sizes = [1, 128], strides = [1, 1]} : vector<1x384xf32> to vector<1x128xf32>
    %248 = arith.addf %246, %247 : vector<1x128xf32>
    %249 = arith.negf %248 : vector<1x128xf32>
    %250 = math.exp %249 : vector<1x128xf32>
    %cst_77 = arith.constant 1.000000e+00 : f32
    %251 = vector.broadcast %cst_77 : f32 to vector<1x128xf32>
    %252 = arith.addf %251, %250 : vector<1x128xf32>
    %253 = arith.divf %251, %252 : vector<1x128xf32>
    %254 = vector.extract_strided_slice %245 {offsets = [0, 128], sizes = [1, 128], strides = [1, 1]} : vector<1x384xf32> to vector<1x128xf32>
    %255 = vector.extract_strided_slice %244 {offsets = [0, 128], sizes = [1, 128], strides = [1, 1]} : vector<1x384xf32> to vector<1x128xf32>
    %256 = arith.addf %254, %255 : vector<1x128xf32>
    %257 = arith.negf %256 : vector<1x128xf32>
    %258 = math.exp %257 : vector<1x128xf32>
    %cst_78 = arith.constant 1.000000e+00 : f32
    %259 = vector.broadcast %cst_78 : f32 to vector<1x128xf32>
    %260 = arith.addf %259, %258 : vector<1x128xf32>
    %261 = arith.divf %259, %260 : vector<1x128xf32>
    %262 = vector.extract_strided_slice %245 {offsets = [0, 256], sizes = [1, 128], strides = [1, 1]} : vector<1x384xf32> to vector<1x128xf32>
    %263 = vector.extract_strided_slice %244 {offsets = [0, 256], sizes = [1, 128], strides = [1, 1]} : vector<1x384xf32> to vector<1x128xf32>
    %264 = arith.addf %263, %19 : vector<1x128xf32>
    %265 = arith.mulf %253, %264 : vector<1x128xf32>
    %266 = arith.addf %262, %265 : vector<1x128xf32>
    %267 = math.tanh %266 : vector<1x128xf32>
    %cst_79 = arith.constant 1.000000e+00 : f32
    %268 = vector.broadcast %cst_79 : f32 to vector<1x128xf32>
    %269 = arith.subf %268, %261 : vector<1x128xf32>
    %270 = arith.mulf %269, %267 : vector<1x128xf32>
    %271 = arith.mulf %261, %235 : vector<1x128xf32>
    %272 = arith.addf %270, %271 : vector<1x128xf32>
    %c6 = arith.constant 6 : index
    %c0_80 = arith.constant 0 : index
    %273 = vector.load %arg13[%c6, %c0_80] : memref<8x128xf32, #tpu.memory_space<vmem>>, vector<1x128xf32>
    tpu.vector_store %arg13[%c6, %c0_80], %272 {strides = array<i32>} : memref<8x128xf32, #tpu.memory_space<vmem>>, vector<1x128xf32>,
    %c8_i32_81 = arith.constant 8 : i32
    %274 = arith.muli %arg0, %c8_i32_81 : i32
    %c6_i32 = arith.constant 6 : i32
    %275 = arith.addi %274, %c6_i32 : i32
    %c0_i32_82 = arith.constant 0 : i32
    %276 = arith.cmpi eq, %275, %c0_i32_82 : i32
    %277 = arith.extui %276 : i1 to i32
    %c0_i32_83 = arith.constant 0 : i32
    %278 = arith.cmpi ne, %277, %c0_i32_83 : i32
    scf.if %278 {
      %c0_105 = arith.constant 0 : index
      %c0_106 = arith.constant 0 : index
      %325 = vector.load %arg11[%c0_105, %c0_106] : memref<1x128xf32, #tpu.memory_space<vmem>>, vector<1x128xf32>
      tpu.vector_store %arg11[%c0_105, %c0_106], %272 {strides = array<i32>} : memref<1x128xf32, #tpu.memory_space<vmem>>, vector<1x128xf32>,
    } else {
    }
    %279 = arith.truncf %272 : vector<1x128xf32> to vector<1x128xbf16>
    %c0_84 = arith.constant 0 : index
    %c0_85 = arith.constant 0 : index
    %280 = vector.load %arg6[%c0_84, %c0_85] : memref<128x384xbf16, #tpu.memory_space<vmem>>, vector<128x384xbf16>
    %cst_86 = arith.constant dense<0.000000e+00> : vector<1x384xf32>
    %281 = tpu.matmul %279, %280, %cst_86 {dimension_numbers = #tpu.dot_dimension_numbers<[1], [0], [0], [1], [0, 0, 1, 1], [], []>} : vector<1x128xbf16>, vector<128x384xbf16>, vector<1x384xf32> -> vector<1x384xf32>
    %282 = vector.extract_strided_slice %17 {offsets = [7, 0], sizes = [1, 384], strides = [1, 1]} : vector<8x384xf32> to vector<1x384xf32>
    %283 = vector.extract_strided_slice %282 {offsets = [0, 0], sizes = [1, 128], strides = [1, 1]} : vector<1x384xf32> to vector<1x128xf32>
    %284 = vector.extract_strided_slice %281 {offsets = [0, 0], sizes = [1, 128], strides = [1, 1]} : vector<1x384xf32> to vector<1x128xf32>
    %285 = arith.addf %283, %284 : vector<1x128xf32>
    %286 = arith.negf %285 : vector<1x128xf32>
    %287 = math.exp %286 : vector<1x128xf32>
    %cst_87 = arith.constant 1.000000e+00 : f32
    %288 = vector.broadcast %cst_87 : f32 to vector<1x128xf32>
    %289 = arith.addf %288, %287 : vector<1x128xf32>
    %290 = arith.divf %288, %289 : vector<1x128xf32>
    %291 = vector.extract_strided_slice %282 {offsets = [0, 128], sizes = [1, 128], strides = [1, 1]} : vector<1x384xf32> to vector<1x128xf32>
    %292 = vector.extract_strided_slice %281 {offsets = [0, 128], sizes = [1, 128], strides = [1, 1]} : vector<1x384xf32> to vector<1x128xf32>
    %293 = arith.addf %291, %292 : vector<1x128xf32>
    %294 = arith.negf %293 : vector<1x128xf32>
    %295 = math.exp %294 : vector<1x128xf32>
    %cst_88 = arith.constant 1.000000e+00 : f32
    %296 = vector.broadcast %cst_88 : f32 to vector<1x128xf32>
    %297 = arith.addf %296, %295 : vector<1x128xf32>
    %298 = arith.divf %296, %297 : vector<1x128xf32>
    %299 = vector.extract_strided_slice %282 {offsets = [0, 256], sizes = [1, 128], strides = [1, 1]} : vector<1x384xf32> to vector<1x128xf32>
    %300 = vector.extract_strided_slice %281 {offsets = [0, 256], sizes = [1, 128], strides = [1, 1]} : vector<1x384xf32> to vector<1x128xf32>
    %301 = arith.addf %300, %19 : vector<1x128xf32>
    %302 = arith.mulf %290, %301 : vector<1x128xf32>
    %303 = arith.addf %299, %302 : vector<1x128xf32>
    %304 = math.tanh %303 : vector<1x128xf32>
    %cst_89 = arith.constant 1.000000e+00 : f32
    %305 = vector.broadcast %cst_89 : f32 to vector<1x128xf32>
    %306 = arith.subf %305, %298 : vector<1x128xf32>
    %307 = arith.mulf %306, %304 : vector<1x128xf32>
    %308 = arith.mulf %298, %272 : vector<1x128xf32>
    %309 = arith.addf %307, %308 : vector<1x128xf32>
    %c7 = arith.constant 7 : index
    %c0_90 = arith.constant 0 : index
    %310 = vector.load %arg13[%c7, %c0_90] : memref<8x128xf32, #tpu.memory_space<vmem>>, vector<1x128xf32>
    tpu.vector_store %arg13[%c7, %c0_90], %309 {strides = array<i32>} : memref<8x128xf32, #tpu.memory_space<vmem>>, vector<1x128xf32>,
    %c8_i32_91 = arith.constant 8 : i32
    %311 = arith.muli %arg0, %c8_i32_91 : i32
    %c7_i32 = arith.constant 7 : i32
    %312 = arith.addi %311, %c7_i32 : i32
    %c0_i32_92 = arith.constant 0 : i32
    %313 = arith.cmpi eq, %312, %c0_i32_92 : i32
    %314 = arith.extui %313 : i1 to i32
    %c0_i32_93 = arith.constant 0 : i32
    %315 = arith.cmpi ne, %314, %c0_i32_93 : i32
    scf.if %315 {
      %c0_105 = arith.constant 0 : index
      %c0_106 = arith.constant 0 : index
      %325 = vector.load %arg11[%c0_105, %c0_106] : memref<1x128xf32, #tpu.memory_space<vmem>>, vector<1x128xf32>
      tpu.vector_store %arg11[%c0_105, %c0_106], %309 {strides = array<i32>} : memref<1x128xf32, #tpu.memory_space<vmem>>, vector<1x128xf32>,
    } else {
    }
    %c0_94 = arith.constant 0 : index
    %c0_95 = arith.constant 0 : index
    %316 = vector.load %arg12[%c0_94, %c0_95] : memref<1x128xf32, #tpu.memory_space<vmem>>, vector<1x128xf32>
    tpu.vector_store %arg12[%c0_94, %c0_95], %309 {strides = array<i32>} : memref<1x128xf32, #tpu.memory_space<vmem>>, vector<1x128xf32>,
    %c0_96 = arith.constant 0 : index
    %c0_97 = arith.constant 0 : index
    %317 = vector.load %arg13[%c0_96, %c0_97] : memref<8x128xf32, #tpu.memory_space<vmem>>, vector<8x128xf32>
    %318 = arith.truncf %317 : vector<8x128xf32> to vector<8x128xbf16>
    %c0_98 = arith.constant 0 : index
    %c0_99 = arith.constant 0 : index
    %319 = vector.load %arg8[%c0_98, %c0_99] : memref<128x128xbf16, #tpu.memory_space<vmem>>, vector<128x128xbf16>
    %cst_100 = arith.constant dense<0.000000e+00> : vector<8x128xf32>
    %320 = tpu.matmul %318, %319, %cst_100 {dimension_numbers = #tpu.dot_dimension_numbers<[1], [0], [0], [1], [0, 0, 1, 1], [], []>} : vector<8x128xbf16>, vector<128x128xbf16>, vector<8x128xf32> -> vector<8x128xf32>
    %c0_101 = arith.constant 0 : index
    %c0_102 = arith.constant 0 : index
    %321 = vector.load %arg9[%c0_101, %c0_102] : memref<1x128xf32, #tpu.memory_space<vmem>>, vector<1x128xf32>
    %322 = vector.broadcast %321 : vector<1x128xf32> to vector<8x128xf32>
    %323 = arith.addf %320, %322 : vector<8x128xf32>
    %c0_103 = arith.constant 0 : index
    %c0_104 = arith.constant 0 : index
    %324 = vector.load %arg10[%c0_103, %c0_104] : memref<8x128xf32, #tpu.memory_space<vmem>>, vector<8x128xf32>
    tpu.vector_store %arg10[%c0_103, %c0_104], %323 {strides = array<i32>} : memref<8x128xf32, #tpu.memory_space<vmem>>, vector<8x128xf32>,
    return
  }
  func.func @transform_0(%arg0: i32) -> (i32, i32) {
    %c0_i32 = arith.constant 0 : i32
    %c0_i32_0 = arith.constant 0 : i32
    return %arg0, %c0_i32 : i32, i32
  }
  func.func @transform_1(%arg0: i32) -> (i32, i32) {
    %c0_i32 = arith.constant 0 : i32
    %c0_i32_0 = arith.constant 0 : i32
    %c0_i32_1 = arith.constant 0 : i32
    return %c0_i32, %c0_i32_0 : i32, i32
  }
  func.func @transform_2(%arg0: i32) -> (i32, i32) {
    %c0_i32 = arith.constant 0 : i32
    %c0_i32_0 = arith.constant 0 : i32
    %c0_i32_1 = arith.constant 0 : i32
    return %c0_i32, %c0_i32_0 : i32, i32
  }
  func.func @transform_3(%arg0: i32) -> (i32, i32) {
    %c0_i32 = arith.constant 0 : i32
    %c0_i32_0 = arith.constant 0 : i32
    %c0_i32_1 = arith.constant 0 : i32
    return %c0_i32, %c0_i32_0 : i32, i32
  }
  func.func @transform_4(%arg0: i32) -> (i32, i32) {
    %c0_i32 = arith.constant 0 : i32
    %c0_i32_0 = arith.constant 0 : i32
    %c0_i32_1 = arith.constant 0 : i32
    return %c0_i32, %c0_i32_0 : i32, i32
  }
  func.func @transform_5(%arg0: i32) -> (i32, i32) {
    %c0_i32 = arith.constant 0 : i32
    %c0_i32_0 = arith.constant 0 : i32
    %c0_i32_1 = arith.constant 0 : i32
    return %c0_i32, %c0_i32_0 : i32, i32
  }
  func.func @transform_6(%arg0: i32) -> (i32, i32) {
    %c0_i32 = arith.constant 0 : i32
    %c0_i32_0 = arith.constant 0 : i32
    %c0_i32_1 = arith.constant 0 : i32
    return %c0_i32, %c0_i32_0 : i32, i32
  }
  func.func @transform_7(%arg0: i32) -> (i32, i32) {
    %c0_i32 = arith.constant 0 : i32
    %c0_i32_0 = arith.constant 0 : i32
    %c0_i32_1 = arith.constant 0 : i32
    return %c0_i32, %c0_i32_0 : i32, i32
  }
  func.func @transform_8(%arg0: i32) -> (i32, i32) {
    %c0_i32 = arith.constant 0 : i32
    %c0_i32_0 = arith.constant 0 : i32
    %c0_i32_1 = arith.constant 0 : i32
    return %c0_i32, %c0_i32_0 : i32, i32
  }
  func.func @transform_9(%arg0: i32) -> (i32, i32) {
    %c0_i32 = arith.constant 0 : i32
    %c0_i32_0 = arith.constant 0 : i32
    return %arg0, %c0_i32 : i32, i32
  }
  func.func @transform_10(%arg0: i32) -> (i32, i32) {
    %c0_i32 = arith.constant 0 : i32
    %c0_i32_0 = arith.constant 0 : i32
    %c0_i32_1 = arith.constant 0 : i32
    return %c0_i32, %c0_i32_0 : i32, i32
  }
}

</mosaic_0001>

<bundles_post_ra>
// kernel: tpu_custom_call.1
= control target key start
LH: loop header
LB: loop body
LE: loop exit
PB: predicated region body
PF: predicated region fallthrough
CT: control target
= control target key end

     0   :  { %16 = vsyncpa [#allocation5], 0  ;;  %s4436_s0 = inlined_call_operand.vmem [shape: s32[8,1], index: 0, kind: input, shape index: {}]   ;;  %s4437_s1 = inlined_call_operand.vmem [shape: f32[1,128], index: 1, kind: input, shape index: {}]   ;;  %s4438_s2 = inlined_call_operand.hbm [shape: bf16[128,128], index: 2, kind: input, shape index: {}]   ;;  %s4439_s3 = inlined_call_operand.hbm [shape: bf16[128,384], index: 3, kind: input, shape index: {}]   ;;  %s4440_s4 = inlined_call_operand.vmem [shape: f32[1,384], index: 4, kind: input, shape index: {}]   ;;  %s4441_s5 = inlined_call_operand.hbm [shape: bf16[128,384], index: 5, kind: input, shape index: {}]   ;;  %s4442_s6 = inlined_call_operand.vmem [shape: f32[1,128], index: 6, kind: input, shape index: {}]   ;;  %s4443_s7 = inlined_call_operand.hbm [shape: bf16[128,128], index: 7, kind: input, shape index: {}]   ;;  %s4444_s8 = inlined_call_operand.vmem [shape: f32[1,128], index: 8, kind: input, shape index: {}]   ;;  %s4445_s9 = inlined_call_operand.hbm [shape: f32[8,128], index: 9, kind: output, shape index: {0}]   ;;  %s4446_s10 = inlined_call_operand.hbm [shape: f32[1,128], index: 10, kind: output, shape index: {1}]  }
   0x1   :  { %17 = vsyncpa [#allocation8], 0 }
   0x2   :  { %18 = vsyncpa [#allocation11], 0 }
   0x3   :  { %19 = vsyncpa [#allocation6], 0 }
   0x4   :  { %20 = vsyncpa [#allocation14], 0  ;;  %s3863_s13 = smov [#allocation7]   ;;  %s3721_s17 = scalar_lea.hbm %s4439_s3, 3072 }
   0x5   :  { %s42_s14 = sshll.u32 %s3863_s13, 4  ;;  %p3722_p0 = scmp.ne.s32.totalorder %s4439_s3, %s3721_s17  ;;  %s43_s14 = int_to_ptr.vmem [resolvable:$true] %s42_s14 }
   0x6   :  { %p3725_p1 = scmp.lt.u32.totalorder %s3721_s17, %s4439_s3 }
   0x8   :  { %p3727_p2 = pnand %p3725_p1, %p3722_p0 }
   0xa   :  { %3730 = shalt.err (!%p3727_p2)
}
   0xb   :  { %s3731_s22 = scalar_lea.vmem %s43_s14, 3072  ;;  %p3736_p4 = scmp.lt.s32.totalorder %s43_s14, %s43_s14 }
   0xc   :  { %p3732_p3 = scmp.ne.s32.totalorder %s43_s14, %s3731_s22  ;;  %p3737_p5 = scmp.lt.s32.totalorder %s3731_s22, %s3731_s22 }
   0xe   :  { %p3738_p6 = por %p3737_p5, %p3736_p4 }
  0x10   :  { %p3739_p7 = pnand %p3738_p6, %p3732_p3 }
  0x12   :  { %3742 = shalt.err (!%p3739_p7)
}
  0x13   :  { %s3864_s23 = smov 192   ;;  %s3865_s24 = smov 12  }
  0x14   :  { %48 = dma.hbm_to_vmem [thread:$0]  %s4439_s3, 3072, %s43_s14, [#allocation8], %s3864_s23, %s3864_s23, %s3865_s24  }
  0x15   :  { %s3866_s27 = smov [#allocation4]   ;;  %s3743_s11 = scalar_lea.hbm %s4438_s2, 1024 }
  0x16   :  { %s30_s28 = sshll.u32 %s3866_s27, 4  ;;  %p3744_p8 = scmp.ne.s32.totalorder %s4438_s2, %s3743_s11  ;;  %s31_s28 = int_to_ptr.vmem [resolvable:$true] %s30_s28 }
  0x17   :  { %p3747_p9 = scmp.lt.u32.totalorder %s3743_s11, %s4438_s2 }
  0x19   :  { %p3749_p10 = pnand %p3747_p9, %p3744_p8 }
  0x1b   :  { %3752 = shalt.err (!%p3749_p10)
}
  0x1c   :  { %s3753_s17 = scalar_lea.vmem %s31_s28, 1024  ;;  %p3758_p12 = scmp.lt.s32.totalorder %s31_s28, %s31_s28 }
  0x1d   :  { %p3754_p11 = scmp.ne.s32.totalorder %s31_s28, %s3753_s17  ;;  %p3759_p13 = scmp.lt.s32.totalorder %s3753_s17, %s3753_s17 }
  0x1f   :  { %p3760_p0 = por %p3759_p13, %p3758_p12 }
  0x21   :  { %p3761_p1 = pnand %p3760_p0, %p3754_p11 }
  0x23   :  { %3764 = shalt.err (!%p3761_p1)
}
  0x24   :  { %s3867_s3 = smov 64   ;;  %s3868_s14 = smov 4  }
  0x25   :  { %36 = dma.hbm_to_vmem [thread:$0]  %s4438_s2, 1024, %s31_s28, [#allocation5], %s3867_s3, %s3867_s3, %s3868_s14  }
  0x26   :  { %s3869_s20 = smov [#allocation9]   ;;  %s3870_s22 = smov [#allocation10]  }
  0x27   :  { %s56_s21 = sshll.u32 %s3869_s20, 4  ;;  %s70_s25 = sshll.u32 %s3870_s22, 4  ;;  %s57_s21 = int_to_ptr.vmem [resolvable:$true] %s56_s21  ;;  %s3962_s25 = int_to_ptr.vmem [resolvable:$true] %s70_s25 }
  0x28   :  { %s3765_s29 = scalar_lea.hbm %s4441_s5, 3072 }
  0x29   :  { %p3766_p2 = scmp.ne.s32.totalorder %s4441_s5, %s3765_s29  ;;  %p3769_p3 = scmp.lt.u32.totalorder %s3765_s29, %s4441_s5 }
  0x2b   :  { %p3771_p4 = pnand %p3769_p3, %p3766_p2 }
  0x2d   :  { %3774 = shalt.err (!%p3771_p4)
}
  0x2e   :  { %s3775_s2 = scalar_lea.vmem %s57_s21, 3072  ;;  %p3780_p6 = scmp.lt.s32.totalorder %s57_s21, %s57_s21 }
  0x2f   :  { %p3776_p5 = scmp.ne.s32.totalorder %s57_s21, %s3775_s2  ;;  %p3781_p7 = scmp.lt.s32.totalorder %s3775_s2, %s3775_s2 }
  0x31   :  { %p3782_p8 = por %p3781_p7, %p3780_p6 }
  0x33   :  { %p3783_p9 = pnand %p3782_p8, %p3776_p5 }
  0x35   :  { %3786 = shalt.err (!%p3783_p9)
}
  0x36   :  { %62 = dma.hbm_to_vmem [thread:$0]  %s4441_s5, 3072, %s57_s21, [#allocation8], %s3864_s23, %s3864_s23, %s3865_s24  }
  0x37   :  { %s3787_s18 = scalar_lea.hbm %s4443_s7, 1024 }
  0x38   :  { %p3788_p10 = scmp.ne.s32.totalorder %s4443_s7, %s3787_s18  ;;  %p3791_p11 = scmp.lt.u32.totalorder %s3787_s18, %s4443_s7 }
  0x3a   :  { %p3793_p12 = pnand %p3791_p11, %p3788_p10 }
  0x3c   :  { %3796 = shalt.err (!%p3793_p12)
}
  0x3d   :  { %s3797_s27 = scalar_lea.vmem %s3962_s25, 1024  ;;  %p3802_p0 = scmp.lt.s32.totalorder %s3962_s25, %s3962_s25 }
  0x3e   :  { %p3798_p13 = scmp.ne.s32.totalorder %s3962_s25, %s3797_s27  ;;  %p3803_p1 = scmp.lt.s32.totalorder %s3797_s27, %s3797_s27 }
  0x40   :  { %p3804_p2 = por %p3803_p1, %p3802_p0 }
  0x42   :  { %p3805_p3 = pnand %p3804_p2, %p3798_p13 }
  0x44   :  { %3808 = shalt.err (!%p3805_p3)
}
  0x45   :  { %76 = dma.hbm_to_vmem [thread:$0]  %s4443_s7, 1024, %s3962_s25, [#allocation11], %s3867_s3, %s3867_s3, %s3868_s14  }
  0x46   :  { %3853 = dma.done.wait [#allocation5], 1024  }
  0x47   :  { %3854 = vsyncadd [#allocation5], 4294966272 }
  0x48   :  { %3855 = dma.done.wait [#allocation8], 6144  }
  0x49   :  { %3856 = vsyncadd [#allocation8], 4294961152 }
  0x4a   :  { %3857 = dma.done.wait [#allocation11], 1024  }
  0x4b   :  { %3858 = vsyncadd [#allocation11], 4294966272  ;;  %v3871_v0 = vmov 0   ;;  %v3872_v1 = vmov 0.0   ;;  %v98_v2 = vld [vmem:[%s4436_s0] sm:$0xff]  ;;  %v3480_v3 = vld [vmem:[#allocation4] sm:$0xff]   ;;  %v99_v27 = vlaneseq }
  0x4c   :  { %3479 = vset.pattern.permute.xlu0 %v3871_v0  ;;  %3245 = vmatprep.subr.bf16.mxu0 %v3872_v1  ;;  %vm3873_vm0 = vmmov 0   ;;  %v3481_v4 = vld [vmem:[#allocation4 + $0x8] sm:$0xff]   ;;  %v3482_v5 = vld [vmem:[#allocation4 + $0x10] sm:$0xff]   ;;  %v3483_v8 = vld [vmem:[#allocation4 + $0x18] sm:$0xff]   ;;  %v3874_v31 = vmov 1.0|1.0  }
  0x4d   :  { %422 = vmatprep.mubr.bf16.mxu1 %v3871_v0  ;;  %102 = vperm.xlu0 %3479, %v98_v2   ;;  %v3488_v6 = vld [vmem:[#allocation7 + $0x4] ss:$12 sps:$4 sm:$0xff]   ;;  %v3490_v7 = vld [vmem:[#allocation7] ss:$12 sps:$4 sm:$0xff]   ;;  %v3492_v9 = vld [vmem:[#allocation7 + $0x1c] ss:$12 sps:$4 sm:$0xff]  }
  0x4e   :  { %3261 = vmatprep.mubr.msk.bf16.mxu0 %vm3873_vm0, %v3872_v1  ;;  %3246 = vmatpush3.bf16.msra.mxu0 %v3480_v3  ;;  %v3494_v10 = vld [vmem:[#allocation7 + $0x18] ss:$12 sps:$4 sm:$0xff]   ;;  %v3496_v11 = vld [vmem:[#allocation7 + $0x34] ss:$12 sps:$4 sm:$0xff]   ;;  %v3498_v13 = vld [vmem:[#allocation7 + $0x30] ss:$12 sps:$4 sm:$0xff]  }
  0x4f   :  { %3247 = vmatprep.subr.bf16.mxu0 %v3872_v1  ;;  %390 = vmatprep.subr.bf16.mxu1 %v3488_v6  ;;  %v3484_v12 = vld [vmem:[#allocation4 + $0x20] sm:$0xff]   ;;  %v3500_v14 = vld [vmem:[#allocation7 + $0x4c] ss:$12 sps:$4 sm:$0xff]   ;;  %v3502_v16 = vld [vmem:[#allocation7 + $0x48] ss:$12 sps:$4 sm:$0xff]   ;;  %v100_v28 = vand.u32 127, %v99_v27 }
  0x50   :  { %391 = vmatpush1.bf16.msra.mxu1 %v3490_v7  ;;  %v3485_v15 = vld [vmem:[#allocation4 + $0x28] sm:$0xff]   ;;  %v3504_v17 = vld [vmem:[#allocation7 + $0x64] ss:$12 sps:$4 sm:$0xff]   ;;  %v3487_v20 = vld [vmem:[#allocation4 + $0x38] sm:$0xff]  }
  0x51   :  { %392 = vmatprep.subr.bf16.mxu1 %v3492_v9  ;;  %v3486_v18 = vld [vmem:[#allocation4 + $0x30] sm:$0xff]   ;;  %v3506_v19 = vld [vmem:[#allocation7 + $0x60] ss:$12 sps:$4 sm:$0xff]   ;;  %v3508_v21 = vld [vmem:[#allocation7 + $0x7c] ss:$12 sps:$4 sm:$0xff]  }
  0x52   :  { %3248 = vmatpush3.bf16.msra.mxu0 %v3481_v4  ;;  %v3510_v22 = vld [vmem:[#allocation7 + $0x78] ss:$12 sps:$4 sm:$0xff]   ;;  %v3512_v23 = vld [vmem:[#allocation7 + $0x94] ss:$12 sps:$4 sm:$0xff]   ;;  %v3514_v24 = vld [vmem:[#allocation7 + $0x90] ss:$12 sps:$4 sm:$0xff]  }
  0x53   :  { %3249 = vmatprep.subr.bf16.mxu0 %v3872_v1  ;;  %v3516_v25 = vld [vmem:[#allocation7 + $0xac] ss:$12 sps:$4 sm:$0xff]   ;;  %v3518_v26 = vld [vmem:[#allocation7 + $0xa8] ss:$12 sps:$4 sm:$0xff]   ;;  %v3503_v34 = vld [vmem:[#allocation7 + $0x50] ss:$12 sps:$4 sm:$0xff]  }
  0x54   :  { %393 = vmatpush1.bf16.msra.mxu1 %v3494_v10  ;;  %v3491_v30 = vld [vmem:[#allocation7 + $0x8] ss:$12 sps:$4 sm:$0xff]   ;;  %v3495_v32 = vld [vmem:[#allocation7 + $0x20] ss:$12 sps:$4 sm:$0xff]   ;;  %v3499_v33 = vld [vmem:[#allocation7 + $0x38] ss:$12 sps:$4 sm:$0xff]  }
  0x55   :  { %394 = vmatprep.subr.bf16.mxu1 %v3496_v11  ;;  %v3507_v35 = vld [vmem:[#allocation7 + $0x68] ss:$12 sps:$4 sm:$0xff]   ;;  %v3511_v36 = vld [vmem:[#allocation7 + $0x80] ss:$12 sps:$4 sm:$0xff]   ;;  %v3515_v37 = vld [vmem:[#allocation7 + $0x98] ss:$12 sps:$4 sm:$0xff]  }
  0x56   :  { %3250 = vmatpush3.bf16.msra.mxu0 %v3482_v5  ;;  %v3519_v38 = vld [vmem:[#allocation7 + $0xb0] ss:$12 sps:$4 sm:$0xff]   ;;  %v96_v40 = vld [vmem:[%s4437_s1] sm:$0x1]  ;;  %v3541_v43 = vld [vmem:[#allocation9 + $0x8] ss:$12 sps:$4 sm:$0xff]  }
  0x57   :  { %3251 = vmatprep.subr.bf16.mxu0 %v3872_v1  ;;  %v4025_v39 = vld [vmem:[#allocation9 + $0x4] ss:$12 sps:$4 sm:$0xff]   ;;  %97 = vst [vmem:[#allocation2] sm:$0x1] %v96_v40  ;;  %v4032_v42 = vld [vmem:[#allocation9] ss:$12 sps:$4 sm:$0xff]  }
  0x58   :  { %395 = vmatpush1.bf16.msra.mxu1 %v3498_v13  ;;  %v4034_v46 = vld [vmem:[#allocation9 + $0x1c] ss:$12 sps:$4 sm:$0xff]   ;;  %v4037_v49 = vld [vmem:[#allocation9 + $0x18] ss:$12 sps:$4 sm:$0xff]   ;;  %v3545_v50 = vld [vmem:[#allocation9 + $0x20] ss:$12 sps:$4 sm:$0xff]  }
  0x59   :  { %396 = vmatprep.subr.bf16.mxu1 %v3500_v14  ;;  %v4040_v51 = vld [vmem:[#allocation9 + $0x34] ss:$12 sps:$4 sm:$0xff]   ;;  %v4047_v52 = vld [vmem:[#allocation9 + $0x30] ss:$12 sps:$4 sm:$0xff]   ;;  %v3546_v53 = vld [vmem:[#allocation9 + $0x38] ss:$12 sps:$4 sm:$0xff]  }
  0x5a   :  { %3252 = vmatpush3.bf16.msra.mxu0 %v3483_v8  ;;  %v4050_v54 = vld [vmem:[#allocation9 + $0x4c] ss:$12 sps:$4 sm:$0xff]   ;;  %v4054_v55 = vld [vmem:[#allocation9 + $0x48] ss:$12 sps:$4 sm:$0xff]   ;;  %v3547_v56 = vld [vmem:[#allocation9 + $0x50] ss:$12 sps:$4 sm:$0xff]  }
  0x5b   :  { %3253 = vmatprep.subr.bf16.mxu0 %v3872_v1  ;;  %v4057_v57 = vld [vmem:[#allocation9 + $0x64] ss:$12 sps:$4 sm:$0xff]   ;;  %v4061_v58 = vld [vmem:[#allocation9 + $0x60] ss:$12 sps:$4 sm:$0xff]   ;;  %v3548_v59 = vld [vmem:[#allocation9 + $0x68] ss:$12 sps:$4 sm:$0xff]  }
  0x5c   :  { %397 = vmatpush1.bf16.msra.mxu1 %v3502_v16  ;;  %v4064_v60 = vld [vmem:[#allocation9 + $0x7c] ss:$12 sps:$4 sm:$0xff]   ;;  %v4068_v61 = vld [vmem:[#allocation9 + $0x78] ss:$12 sps:$4 sm:$0xff]   ;;  %v3549_v62 = vld [vmem:[#allocation9 + $0x80] ss:$12 sps:$4 sm:$0xff]  }
  0x5d   :  { %398 = vmatprep.subr.bf16.mxu1 %v3504_v17  ;;  %v4071_v63 = vld [vmem:[#allocation9 + $0x94] ss:$12 sps:$4 sm:$0xff]   ;;  %v4075_v2 = vld [vmem:[#allocation9 + $0x90] ss:$12 sps:$4 sm:$0xff]   ;;  %v3550_v3 = vld [vmem:[#allocation9 + $0x98] ss:$12 sps:$4 sm:$0xff]  }
  0x5e   :  { %3254 = vmatpush3.bf16.msra.mxu0 %v3484_v12  ;;  %v4078_v4 = vld [vmem:[#allocation9 + $0xac] ss:$12 sps:$4 sm:$0xff]   ;;  %v4082_v5 = vld [vmem:[#allocation9 + $0xa8] ss:$12 sps:$4 sm:$0xff]   ;;  %v3551_v7 = vld [vmem:[#allocation9 + $0xb0] ss:$12 sps:$4 sm:$0xff]  }
  0x5f   :  { %3255 = vmatprep.subr.bf16.mxu0 %v3872_v1  ;;  %v4084_v6 = vld [vmem:[#allocation2] sm:$0x1]  ;;  %v3553_v10 = vld [vmem:[#allocation9 + $0x20] ss:$12 sps:$4 sm:$0xff]   ;;  %v3554_v11 = vld [vmem:[#allocation9 + $0x38] ss:$12 sps:$4 sm:$0xff]  }
  0x60   :  { %399 = vmatpush1.bf16.msra.mxu1 %v3506_v19  ;;  %v473_v8 = vpack.c.bf16 %v4084_v6, %v4084_v6  ;;  %v3552_v9 = vld [vmem:[#allocation9 + $0x8] ss:$12 sps:$4 sm:$0xff]   ;;  %v3555_v12 = vld [vmem:[#allocation9 + $0x50] ss:$12 sps:$4 sm:$0xff]   ;;  %v3557_v14 = vld [vmem:[#allocation9 + $0x80] ss:$12 sps:$4 sm:$0xff]  }
  0x61   :  { %400 = vmatprep.subr.bf16.mxu1 %v3508_v21  ;;  %v3556_v13 = vld [vmem:[#allocation9 + $0x68] ss:$12 sps:$4 sm:$0xff]   ;;  %v3559_v16 = vld [vmem:[#allocation9 + $0xb0] ss:$12 sps:$4 sm:$0xff]   ;;  %v248_v17 = vshrl.u32 %v99_v27, 7 }
  0x62   :  { %3256 = vmatpush3.bf16.msra.mxu0 %v3485_v15  ;;  %v3558_v15 = vld [vmem:[#allocation9 + $0x98] ss:$12 sps:$4 sm:$0xff]  }
  0x63   :  { %3257 = vmatprep.subr.bf16.mxu0 %v3872_v1  ;;  %v257_v19 = vsub.s32 2, %v248_v17  ;;  %v253_v21 = vsub.s32 1, %v248_v17 }
  0x64   :  { %401 = vmatpush1.bf16.msra.mxu1 %v3510_v22 }
  0x65   :  { %402 = vmatprep.subr.bf16.mxu1 %v3512_v23 }
  0x66   :  { %3258 = vmatpush3.bf16.msra.mxu0 %v3486_v18  ;;  %v249_v18 = vsub.s32 0, %v248_v17 }
  0x67   :  { %3259 = vmatprep.subr.bf16.mxu0 %v3872_v1 }
  0x68   :  { %403 = vmatpush1.bf16.msra.mxu1 %v3514_v24 }
  0x69   :  { %404 = vmatprep.subr.bf16.mxu1 %v3516_v25 }
  0x6a   :  { %3260 = vmatpush3.bf16.msra.mxu0 %v3487_v20  ;;  %v245_v20 = vld [vmem:[%s4440_s4] sm:$0x7] }
  0x6b   :  { %3265 = vmatprep.subr.bf16.mxu0 %v3872_v1  ;;  %v250_v22 = vrot.slane %v245_v20, %v249_v18  ;;  %v258_v23 = vrot.slane %v245_v20, %v257_v19  ;;  %v254_v24 = vrot.slane %v245_v20, %v253_v21  ;;  %v3561_v19 = vld [vmem:[#allocation9 + $0x20] ss:$12 sps:$4 sm:$0xff]   ;;  %v3562_v20 = vld [vmem:[#allocation9 + $0x38] ss:$12 sps:$4 sm:$0xff]   ;;  %v3563_v21 = vld [vmem:[#allocation9 + $0x50] ss:$12 sps:$4 sm:$0xff]  }
  0x6c   :  { %405 = vmatpush1.bf16.msra.mxu1 %v3518_v26 }
  0x6d   :  { %634 = vmatprep.subr.bf16.mxu1 %v4025_v39 }
  0xcc   :  { %v103_v29 = vpop.permute.xlu0 %102 }
  0xcd   :  { %vm104_vm1 = vcmp.eq.s32.totalorder %v100_v28, %v103_v29 }
  0xce   :  { %vm2903_vm2 = vmpackc.low %vm104_vm1, %vm104_vm1 }
  0xcf   :  { %3262 = vmatmul.mubr.msk.bf16.vlgmr.msra.gmra.mrb[0].mxu0 %vm2903_vm2, %v3874_v31 }
  0xd0   :  { %3266 = vmatpush3.bf16.msra.mxu0 %v3491_v30  ;;  %3281 = vmatprep.mubr.msk.bf16.mxu0 %vm3873_vm0, %v3872_v1 }
  0xd1   :  { %3267 = vmatprep.subr.bf16.mxu0 %v3872_v1 }
  0xd4   :  { %3268 = vmatpush3.bf16.msra.mxu0 %v3495_v32 }
  0xd5   :  { %3269 = vmatprep.subr.bf16.mxu0 %v3872_v1 }
  0xd8   :  { %3270 = vmatpush3.bf16.msra.mxu0 %v3499_v33 }
  0xd9   :  { %3271 = vmatprep.subr.bf16.mxu0 %v3872_v1 }
  0xdc   :  { %3272 = vmatpush3.bf16.msra.mxu0 %v3503_v34 }
  0xdd   :  { %3273 = vmatprep.subr.bf16.mxu0 %v3872_v1 }
  0xe0   :  { %3274 = vmatpush3.bf16.msra.mxu0 %v3507_v35 }
  0xe1   :  { %3275 = vmatprep.subr.bf16.mxu0 %v3872_v1 }
  0xe4   :  { %3276 = vmatpush3.bf16.msra.mxu0 %v3511_v36 }
  0xe5   :  { %3277 = vmatprep.subr.bf16.mxu0 %v3872_v1 }
  0xe8   :  { %3278 = vmatpush3.bf16.msra.mxu0 %v3515_v37 }
  0xe9   :  { %3279 = vmatprep.subr.bf16.mxu0 %v3872_v1 }
  0xec   :  { %3280 = vmatpush3.bf16.msra.mxu0 %v3519_v38 }
  0xed   :  { %3285 = vmatprep.subr.bf16.mxu0 %v3872_v1 }
 0x1a2   :  { %v206_v41 = vpop.f32.mrb[0].mxu0 }
 0x1a3   :  { %v212_v44 = vpack.c.bf16 %v206_v41, %v206_v41  ;;  %v3263_v45 = vpop.f32.mrb[1].mxu0 }
 0x1a4   :  { %v209_v47 = vpop.f32.mrb[2].mxu0 }
 0x1a5   :  { %v3264_v48 = vpop.f32.mrb[3].mxu0  ;;  %423 = vmatmul.mubr.bf16.vlgmr.msra.gmra.mrb[0].mxu1 %v212_v44  ;;  %3282 = vmatmul.mubr.bf16.vlgmr.msra.gmra.mrb[4].mxu0 %v212_v44 }
 0x1a6   :  { %635 = vmatpush1.bf16.msra.mxu1 %v4032_v42  ;;  %3286 = vmatpush3.bf16.msra.mxu0 %v3541_v43 }
 0x1a7   :  { %636 = vmatprep.subr.bf16.mxu1 %v4034_v46  ;;  %3287 = vmatprep.subr.bf16.mxu0 %v3872_v1 }
 0x1a8   :  { %666 = vmatprep.mubr.bf16.mxu1 %v3871_v0  ;;  %3301 = vmatprep.mubr.msk.bf16.mxu0 %vm3873_vm0, %v3872_v1 }
 0x1aa   :  { %637 = vmatpush1.bf16.msra.mxu1 %v4037_v49  ;;  %3288 = vmatpush3.bf16.msra.mxu0 %v3545_v50 }
 0x1ab   :  { %638 = vmatprep.subr.bf16.mxu1 %v4040_v51  ;;  %3289 = vmatprep.subr.bf16.mxu0 %v3872_v1 }
 0x1ae   :  { %639 = vmatpush1.bf16.msra.mxu1 %v4047_v52  ;;  %3290 = vmatpush3.bf16.msra.mxu0 %v3546_v53 }
 0x1af   :  { %640 = vmatprep.subr.bf16.mxu1 %v4050_v54  ;;  %3291 = vmatprep.subr.bf16.mxu0 %v3872_v1 }
 0x1b2   :  { %641 = vmatpush1.bf16.msra.mxu1 %v4054_v55  ;;  %3292 = vmatpush3.bf16.msra.mxu0 %v3547_v56 }
 0x1b3   :  { %642 = vmatprep.subr.bf16.mxu1 %v4057_v57  ;;  %3293 = vmatprep.subr.bf16.mxu0 %v3872_v1 }
 0x1b6   :  { %643 = vmatpush1.bf16.msra.mxu1 %v4061_v58  ;;  %3294 = vmatpush3.bf16.msra.mxu0 %v3548_v59 }
 0x1b7   :  { %644 = vmatprep.subr.bf16.mxu1 %v4064_v60  ;;  %3295 = vmatprep.subr.bf16.mxu0 %v3872_v1 }
 0x1ba   :  { %645 = vmatpush1.bf16.msra.mxu1 %v4068_v61  ;;  %3296 = vmatpush3.bf16.msra.mxu0 %v3549_v62 }
 0x1bb   :  { %646 = vmatprep.subr.bf16.mxu1 %v4071_v63  ;;  %3297 = vmatprep.subr.bf16.mxu0 %v3872_v1 }
 0x1be   :  { %647 = vmatpush1.bf16.msra.mxu1 %v4075_v2  ;;  %3298 = vmatpush3.bf16.msra.mxu0 %v3550_v3  ;;  %v4135_v3 = vld [vmem:[%s4442_s6] sm:$0x1] }
 0x1bf   :  { %648 = vmatprep.subr.bf16.mxu1 %v4078_v4  ;;  %3299 = vmatprep.subr.bf16.mxu0 %v3872_v1 }
 0x1c2   :  { %649 = vmatpush1.bf16.msra.mxu1 %v4082_v5  ;;  %3300 = vmatpush3.bf16.msra.mxu0 %v3551_v7 }
 0x1c3   :  { %905 = vmatprep.subr.bf16.mxu1 %v4025_v39  ;;  %3305 = vmatprep.subr.bf16.mxu0 %v3872_v1 }
 0x1c5   :  { %667 = vmatmul.mubr.bf16.vlgmr.msra.gmra.mrb[4].mxu1 %v473_v8  ;;  %3302 = vmatmul.mubr.bf16.vlgmr.msra.gmra.mrb[8].mxu0 %v473_v8 }
 0x1c6   :  { %906 = vmatpush1.bf16.msra.mxu1 %v4032_v42  ;;  %937 = vmatprep.mubr.bf16.mxu1 %v3871_v0 }
 0x1c7   :  { %907 = vmatprep.subr.bf16.mxu1 %v4034_v46  ;;  %3321 = vmatprep.mubr.msk.bf16.mxu0 %vm3873_vm0, %v3872_v1 }
 0x1c8   :  { %3306 = vmatpush3.bf16.msra.mxu0 %v3552_v9 }
 0x1c9   :  { %3307 = vmatprep.subr.bf16.mxu0 %v3872_v1 }
 0x1ca   :  { %908 = vmatpush1.bf16.msra.mxu1 %v4037_v49 }
 0x1cb   :  { %909 = vmatprep.subr.bf16.mxu1 %v4040_v51 }
 0x1cc   :  { %3308 = vmatpush3.bf16.msra.mxu0 %v3553_v10 }
 0x1cd   :  { %3309 = vmatprep.subr.bf16.mxu0 %v3872_v1 }
 0x1ce   :  { %910 = vmatpush1.bf16.msra.mxu1 %v4047_v52 }
 0x1cf   :  { %911 = vmatprep.subr.bf16.mxu1 %v4050_v54 }
 0x1d0   :  { %3310 = vmatpush3.bf16.msra.mxu0 %v3554_v11 }
 0x1d1   :  { %3311 = vmatprep.subr.bf16.mxu0 %v3872_v1 }
 0x1d2   :  { %912 = vmatpush1.bf16.msra.mxu1 %v4054_v55 }
 0x1d3   :  { %913 = vmatprep.subr.bf16.mxu1 %v4057_v57 }
 0x1d4   :  { %3312 = vmatpush3.bf16.msra.mxu0 %v3555_v12 }
 0x1d5   :  { %3313 = vmatprep.subr.bf16.mxu0 %v3872_v1 }
 0x1d6   :  { %914 = vmatpush1.bf16.msra.mxu1 %v4061_v58 }
 0x1d7   :  { %915 = vmatprep.subr.bf16.mxu1 %v4064_v60 }
 0x1d8   :  { %3314 = vmatpush3.bf16.msra.mxu0 %v3556_v13 }
 0x1d9   :  { %3315 = vmatprep.subr.bf16.mxu0 %v3872_v1 }
 0x1da   :  { %916 = vmatpush1.bf16.msra.mxu1 %v4068_v61 }
 0x1db   :  { %917 = vmatprep.subr.bf16.mxu1 %v4071_v63 }
 0x1dc   :  { %3316 = vmatpush3.bf16.msra.mxu0 %v3557_v14 }
 0x1dd   :  { %3317 = vmatprep.subr.bf16.mxu0 %v3872_v1 }
 0x1de   :  { %918 = vmatpush1.bf16.msra.mxu1 %v4075_v2 }
 0x1df   :  { %919 = vmatprep.subr.bf16.mxu1 %v4078_v4 }
 0x1e0   :  { %3318 = vmatpush3.bf16.msra.mxu0 %v3558_v15 }
 0x1e1   :  { %3319 = vmatprep.subr.bf16.mxu0 %v3872_v1 }
 0x1e2   :  { %920 = vmatpush1.bf16.msra.mxu1 %v4082_v5 }
 0x1e3   :  { %1192 = vmatprep.subr.bf16.mxu1 %v4025_v39 }
 0x1e4   :  { %3320 = vmatpush3.bf16.msra.mxu0 %v3559_v16 }
 0x1e5   :  { %3325 = vmatprep.subr.bf16.mxu0 %v3872_v1 }
 0x278   :  { %v424_v25 = vpop.f32.mrb[0].mxu1  ;;  %v465_v26 = vpop.f32.mrb[4].mxu0 }
 0x279   :  { %v4124_v28 = vadd.f32 %v424_v25, %v250_v22  ;;  %v4126_v29 = vadd.f32 %v465_v26, %v258_v23  ;;  %v426_v30 = vpop.f32.mrb[1].mxu1  ;;  %v3283_v31 = vpop.f32.mrb[5].mxu0  ;;  %v3564_v22 = vld [vmem:[#allocation9 + $0x68] ss:$12 sps:$4 sm:$0xff]   ;;  %v3565_v23 = vld [vmem:[#allocation9 + $0x80] ss:$12 sps:$4 sm:$0xff]  }
 0x27a   :  { %v4128_v32 = vadd.f32 %v426_v30, %v254_v24  ;;  %v428_v27 = vpop.f32.mrb[2].mxu1  ;;  %v468_v33 = vpop.f32.mrb[6].mxu0  ;;  %v3567_v24 = vld [vmem:[#allocation9 + $0xb0] ss:$12 sps:$4 sm:$0xff]  }
 0x27b   :  { %v429_v34 = vpop.f32.mrb[3].mxu1  ;;  %v3284_v35 = vpop.f32.mrb[7].mxu0 }
 0x298   :  { %v668_v36 = vpop.f32.mrb[4].mxu1  ;;  %v709_v37 = vpop.f32.mrb[8].mxu0 }
 0x299   :  { %v715_v38 = vadd.f32 %v668_v36, %v4124_v28  ;;  %v670_v40 = vpop.f32.mrb[5].mxu1  ;;  %v3303_v41 = vpop.f32.mrb[9].mxu0  ;;  %v729_v8 = vadd.f32 %v709_v37, %v4135_v3 }
 0x29a   :  { %v672_v43 = vpop.f32.mrb[6].mxu1  ;;  %v712_v44 = vpop.f32.mrb[10].mxu0  ;;  %v722_v50 = vadd.f32 %v670_v40, %v4128_v32 }
 0x29b   :  { %v2953_v45 = vmul.f32 -1.442695, %v715_v38  ;;  %v673_v47 = vpop.f32.mrb[7].mxu1  ;;  %v3304_v48 = vpop.f32.mrb[11].mxu0 }
 0x29c   :  { %v2954_v53 = vmul.f32 -1.442695, %v722_v50 }
 0x29d   :  { %3640 = vpow2.f32 %v2953_v45 }
 0x29e   :  { %3642 = vpow2.f32 %v2954_v53 }
 0x2a7   :  { %v3641_v56 = vpop.eup %3640 }
 0x2a8   :  { %v719_v59 = vadd.f32 1.0, %v3641_v56  ;;  %v3643_v62 = vpop.eup %3642 }
 0x2a9   :  { %v726_v7 = vadd.f32 1.0, %v3643_v62 }
 0x2aa   :  { %3644 = vrcp.f32 %v719_v59 }
 0x2ab   :  { %3646 = vrcp.f32 %v726_v7 }
 0x2b4   :  { %v3645_v9 = vpop.eup %3644 }
 0x2b5   :  { %v730_v10 = vmul.f32 %v3645_v9, %v729_v8  ;;  %v3647_v12 = vpop.eup %3646 }
 0x2b6   :  { %v733_v13 = vsub.f32 1.0, %v3647_v12  ;;  %v735_v15 = vmul.f32 %v3647_v12, %v4084_v6  ;;  %v3560_v6 = vld [vmem:[#allocation9 + $0x8] ss:$12 sps:$4 sm:$0xff]  }
 0x2b7   :  { %v731_v11 = vadd.f32 %v730_v10, %v4126_v29 }
 0x2b9   :  { %3648 = vtanh.f32 %v731_v11 }
 0x2c3   :  { %v3649_v14 = vpop.eup %3648 }
 0x2c4   :  { %v734_v16 = vmul.f32 %v3649_v14, %v733_v13 }
 0x2c6   :  { %v4140_v17 = vadd.f32 %v735_v15, %v734_v16 }
 0x2c8   :  { %737 = vst [vmem:[#allocation3] sm:$0x1] %v4140_v17  ;;  %v744_v18 = vpack.c.bf16 %v4140_v17, %v4140_v17  ;;  %743 = vst [vmem:[#allocation13] sm:$0x1] %v4140_v17  ;;  %v1016_v59 = vrot.slane %v4140_v17, 7 }
 0x2ca   :  { %938 = vmatmul.mubr.bf16.vlgmr.msra.gmra.mrb[8].mxu1 %v744_v18  ;;  %3322 = vmatmul.mubr.bf16.vlgmr.msra.gmra.mrb[12].mxu0 %v744_v18 }
 0x2cb   :  { %1193 = vmatpush1.bf16.msra.mxu1 %v4032_v42  ;;  %1224 = vmatprep.mubr.bf16.mxu1 %v3871_v0 }
 0x2cc   :  { %1194 = vmatprep.subr.bf16.mxu1 %v4034_v46  ;;  %3341 = vmatprep.mubr.msk.bf16.mxu0 %vm3873_vm0, %v3872_v1 }
 0x2cd   :  { %3326 = vmatpush3.bf16.msra.mxu0 %v3560_v6 }
 0x2ce   :  { %3327 = vmatprep.subr.bf16.mxu0 %v3872_v1 }
 0x2cf   :  { %1195 = vmatpush1.bf16.msra.mxu1 %v4037_v49 }
 0x2d0   :  { %1196 = vmatprep.subr.bf16.mxu1 %v4040_v51 }
 0x2d1   :  { %3328 = vmatpush3.bf16.msra.mxu0 %v3561_v19 }
 0x2d2   :  { %3329 = vmatprep.subr.bf16.mxu0 %v3872_v1 }
 0x2d3   :  { %1197 = vmatpush1.bf16.msra.mxu1 %v4047_v52 }
 0x2d4   :  { %1198 = vmatprep.subr.bf16.mxu1 %v4050_v54 }
 0x2d5   :  { %3330 = vmatpush3.bf16.msra.mxu0 %v3562_v20 }
 0x2d6   :  { %3331 = vmatprep.subr.bf16.mxu0 %v3872_v1 }
 0x2d7   :  { %1199 = vmatpush1.bf16.msra.mxu1 %v4054_v55 }
 0x2d8   :  { %1200 = vmatprep.subr.bf16.mxu1 %v4057_v57 }
 0x2d9   :  { %3332 = vmatpush3.bf16.msra.mxu0 %v3563_v21 }
 0x2da   :  { %3333 = vmatprep.subr.bf16.mxu0 %v3872_v1 }
 0x2db   :  { %1201 = vmatpush1.bf16.msra.mxu1 %v4061_v58 }
 0x2dc   :  { %1202 = vmatprep.subr.bf16.mxu1 %v4064_v60 }
 0x2dd   :  { %3334 = vmatpush3.bf16.msra.mxu0 %v3564_v22 }
 0x2de   :  { %3335 = vmatprep.subr.bf16.mxu0 %v3872_v1 }
 0x2df   :  { %1203 = vmatpush1.bf16.msra.mxu1 %v4068_v61 }
 0x2e0   :  { %1204 = vmatprep.subr.bf16.mxu1 %v4071_v63 }
 0x2e1   :  { %3336 = vmatpush3.bf16.msra.mxu0 %v3565_v23 }
 0x2e2   :  { %3337 = vmatprep.subr.bf16.mxu0 %v3872_v1 }
 0x2e3   :  { %1205 = vmatpush1.bf16.msra.mxu1 %v4075_v2 }
 0x2e4   :  { %1206 = vmatprep.subr.bf16.mxu1 %v4078_v4 }
 0x2e7   :  { %1207 = vmatpush1.bf16.msra.mxu1 %v4082_v5 }
 0x2e8   :  { %1478 = vmatprep.subr.bf16.mxu1 %v4025_v39  ;;  %v3566_v39 = vld [vmem:[#allocation9 + $0x98] ss:$12 sps:$4 sm:$0xff]  }
 0x2e9   :  { %3338 = vmatpush3.bf16.msra.mxu0 %v3566_v39 }
 0x2ea   :  { %3339 = vmatprep.subr.bf16.mxu0 %v3872_v1 }
 0x2ed   :  { %3340 = vmatpush3.bf16.msra.mxu0 %v3567_v24 }
 0x2ee   :  { %3345 = vmatprep.subr.bf16.mxu0 %v3872_v1 }
 0x39d   :  { %v939_v25 = vpop.f32.mrb[8].mxu1  ;;  %v980_v26 = vpop.f32.mrb[12].mxu0 }
 0x39e   :  { %v987_v30 = vrot.slane %v939_v25, 7  ;;  %v941_v31 = vpop.f32.mrb[9].mxu1  ;;  %v3323_v27 = vpop.f32.mrb[13].mxu0  ;;  %v1006_v50 = vadd.f32 %v980_v26, %v4135_v3 }
 0x39f   :  { %v997_v33 = vrot.slane %v941_v31, 7  ;;  %v943_v34 = vpop.f32.mrb[10].mxu1  ;;  %v983_v35 = vpop.f32.mrb[14].mxu0 }
 0x3a0   :  { %v989_v36 = vadd.f32 %v987_v30, %v4124_v28  ;;  %v944_v37 = vpop.f32.mrb[11].mxu1  ;;  %v3324_v38 = vpop.f32.mrb[15].mxu0  ;;  %v1008_v53 = vrot.slane %v1006_v50, 7  ;;  %v4231_v50 = vld [vmem:[#allocation9 + $0x18] ss:$12 sps:$4 sm:$0xff]  }
 0x3a1   :  { %v999_v40 = vadd.f32 %v997_v33, %v4128_v32 }
 0x3a2   :  { %v2979_v41 = vmul.f32 -1.442695, %v989_v36 }
 0x3a3   :  { %v2980_v43 = vmul.f32 -1.442695, %v999_v40 }
 0x3a4   :  { %3650 = vpow2.f32 %v2979_v41 }
 0x3a5   :  { %3652 = vpow2.f32 %v2980_v43 }
 0x3ae   :  { %v3651_v44 = vpop.eup %3650 }
 0x3af   :  { %v3653_v45 = vpop.eup %3652  ;;  %v993_v47 = vadd.f32 1.0, %v3651_v44  ;;  %v4222_v44 = vld [vmem:[#allocation9 + $0x4] ss:$12 sps:$4 sm:$0xff]  }
 0x3b0   :  { %v1003_v48 = vadd.f32 1.0, %v3653_v45  ;;  %v4224_v45 = vld [vmem:[#allocation9] ss:$12 sps:$4 sm:$0xff]  }
 0x3b1   :  { %3654 = vrcp.f32 %v993_v47  ;;  %v3579_v47 = vld [vmem:[#allocation9 + $0x8] ss:$12 sps:$4 sm:$0xff]  }
 0x3b2   :  { %3656 = vrcp.f32 %v1003_v48  ;;  %v4228_v48 = vld [vmem:[#allocation9 + $0x1c] ss:$12 sps:$4 sm:$0xff]  }
 0x3bb   :  { %v3655_v56 = vpop.eup %3654 }
 0x3bc   :  { %v3657_v62 = vpop.eup %3656  ;;  %v1010_v7 = vmul.f32 %v3655_v56, %v1008_v53  ;;  %v3583_v53 = vld [vmem:[#allocation9 + $0x20] ss:$12 sps:$4 sm:$0xff]  }
 0x3bd   :  { %v1018_v8 = vmul.f32 %v3657_v62, %v1016_v59  ;;  %v1013_v10 = vsub.f32 1.0, %v3657_v62  ;;  %v4235_v56 = vld [vmem:[#allocation9 + $0x34] ss:$12 sps:$4 sm:$0xff]   ;;  %v4238_v59 = vld [vmem:[#allocation9 + $0x30] ss:$12 sps:$4 sm:$0xff]  }
 0x3be   :  { %v1011_v9 = vadd.f32 %v1010_v7, %v4126_v29  ;;  %v3587_v62 = vld [vmem:[#allocation9 + $0x38] ss:$12 sps:$4 sm:$0xff]  }
 0x3bf   :  { %v4242_v7 = vld [vmem:[#allocation9 + $0x4c] ss:$12 sps:$4 sm:$0xff]  }
 0x3c0   :  { %3658 = vtanh.f32 %v1011_v9  ;;  %v3591_v9 = vld [vmem:[#allocation9 + $0x50] ss:$12 sps:$4 sm:$0xff]  }
 0x3ca   :  { %v3659_v11 = vpop.eup %3658 }
 0x3cb   :  { %v1014_v12 = vmul.f32 %v3659_v11, %v1013_v10  ;;  %v4248_v10 = vld [vmem:[#allocation9 + $0x64] ss:$12 sps:$4 sm:$0xff]   ;;  %v4251_v11 = vld [vmem:[#allocation9 + $0x60] ss:$12 sps:$4 sm:$0xff]  }
 0x3cd   :  { %v4178_v13 = vadd.f32 %v1018_v8, %v1014_v12  ;;  %v4245_v8 = vld [vmem:[#allocation9 + $0x48] ss:$12 sps:$4 sm:$0xff]  }
 0x3ce   :  { %v3595_v12 = vld [vmem:[#allocation9 + $0x68] ss:$12 sps:$4 sm:$0xff]  }
 0x3cf   :  { %1020 = vst [vmem:[#allocation3] sm:$0x2] %v4178_v13  ;;  %v1027_v14 = vpack.c.bf16 %v4178_v13, %v4178_v13  ;;  %v1303_v31 = vrot.slane %v4178_v13, 7  ;;  %v4255_v13 = vld [vmem:[#allocation9 + $0x7c] ss:$12 sps:$4 sm:$0xff]  }
 0x3d1   :  { %v1061_v15 = vshrl.u32 %v1027_v14, 16  ;;  %v4258_v14 = vld [vmem:[#allocation9 + $0x78] ss:$12 sps:$4 sm:$0xff]  }
 0x3d3   :  { %1225 = vmatmul.mubr.bf16.vlgmr.msra.gmra.mrb[12].mxu1 %v1061_v15  ;;  %3342 = vmatmul.mubr.bf16.vlgmr.msra.gmra.mrb[16].mxu0 %v1061_v15  ;;  %v3599_v15 = vld [vmem:[#allocation9 + $0x80] ss:$12 sps:$4 sm:$0xff]  }
 0x3d4   :  { %1479 = vmatpush1.bf16.msra.mxu1 %v4032_v42  ;;  %1510 = vmatprep.mubr.bf16.mxu1 %v3871_v0  ;;  %v3568_v42 = vld [vmem:[#allocation9 + $0x8] ss:$12 sps:$4 sm:$0xff]  }
 0x3d5   :  { %1480 = vmatprep.subr.bf16.mxu1 %v4034_v46  ;;  %3361 = vmatprep.mubr.msk.bf16.mxu0 %vm3873_vm0, %v3872_v1  ;;  %v3569_v46 = vld [vmem:[#allocation9 + $0x20] ss:$12 sps:$4 sm:$0xff]  }
 0x3d6   :  { %3346 = vmatpush3.bf16.msra.mxu0 %v3568_v42  ;;  %v4262_v42 = vld [vmem:[#allocation9 + $0x94] ss:$12 sps:$4 sm:$0xff]  }
 0x3d7   :  { %3347 = vmatprep.subr.bf16.mxu0 %v3872_v1 }
 0x3d8   :  { %1481 = vmatpush1.bf16.msra.mxu1 %v4037_v49  ;;  %v3570_v49 = vld [vmem:[#allocation9 + $0x38] ss:$12 sps:$4 sm:$0xff]  }
 0x3d9   :  { %1482 = vmatprep.subr.bf16.mxu1 %v4040_v51  ;;  %v3571_v51 = vld [vmem:[#allocation9 + $0x50] ss:$12 sps:$4 sm:$0xff]  }
 0x3da   :  { %3348 = vmatpush3.bf16.msra.mxu0 %v3569_v46  ;;  %v4265_v46 = vld [vmem:[#allocation9 + $0x90] ss:$12 sps:$4 sm:$0xff]  }
 0x3db   :  { %3349 = vmatprep.subr.bf16.mxu0 %v3872_v1 }
 0x3dc   :  { %1483 = vmatpush1.bf16.msra.mxu1 %v4047_v52  ;;  %v3572_v52 = vld [vmem:[#allocation9 + $0x68] ss:$12 sps:$4 sm:$0xff]  }
 0x3dd   :  { %1484 = vmatprep.subr.bf16.mxu1 %v4050_v54  ;;  %v3573_v54 = vld [vmem:[#allocation9 + $0x80] ss:$12 sps:$4 sm:$0xff]  }
 0x3de   :  { %3350 = vmatpush3.bf16.msra.mxu0 %v3570_v49  ;;  %v3603_v49 = vld [vmem:[#allocation9 + $0x98] ss:$12 sps:$4 sm:$0xff]  }
 0x3df   :  { %3351 = vmatprep.subr.bf16.mxu0 %v3872_v1 }
 0x3e0   :  { %1485 = vmatpush1.bf16.msra.mxu1 %v4054_v55  ;;  %v3574_v55 = vld [vmem:[#allocation9 + $0x98] ss:$12 sps:$4 sm:$0xff]  }
 0x3e1   :  { %1486 = vmatprep.subr.bf16.mxu1 %v4057_v57  ;;  %v3575_v57 = vld [vmem:[#allocation9 + $0xb0] ss:$12 sps:$4 sm:$0xff]  }
 0x3e2   :  { %3352 = vmatpush3.bf16.msra.mxu0 %v3571_v51  ;;  %v4269_v51 = vld [vmem:[#allocation9 + $0xac] ss:$12 sps:$4 sm:$0xff]  }
 0x3e3   :  { %3353 = vmatprep.subr.bf16.mxu0 %v3872_v1 }
 0x3e4   :  { %1487 = vmatpush1.bf16.msra.mxu1 %v4061_v58 }
 0x3e5   :  { %1488 = vmatprep.subr.bf16.mxu1 %v4064_v60 }
 0x3e6   :  { %3354 = vmatpush3.bf16.msra.mxu0 %v3572_v52  ;;  %v4272_v52 = vld [vmem:[#allocation9 + $0xa8] ss:$12 sps:$4 sm:$0xff]  }
 0x3e7   :  { %3355 = vmatprep.subr.bf16.mxu0 %v3872_v1 }
 0x3e8   :  { %1489 = vmatpush1.bf16.msra.mxu1 %v4068_v61 }
 0x3e9   :  { %1490 = vmatprep.subr.bf16.mxu1 %v4071_v63 }
 0x3ea   :  { %3356 = vmatpush3.bf16.msra.mxu0 %v3573_v54  ;;  %v3607_v54 = vld [vmem:[#allocation9 + $0xb0] ss:$12 sps:$4 sm:$0xff]  }
 0x3eb   :  { %3357 = vmatprep.subr.bf16.mxu0 %v3872_v1 }
 0x3ec   :  { %1491 = vmatpush1.bf16.msra.mxu1 %v4075_v2 }
 0x3ed   :  { %1492 = vmatprep.subr.bf16.mxu1 %v4078_v4 }
 0x3ee   :  { %3358 = vmatpush3.bf16.msra.mxu0 %v3574_v55 }
 0x3ef   :  { %3359 = vmatprep.subr.bf16.mxu0 %v3872_v1 }
 0x3f0   :  { %1493 = vmatpush1.bf16.msra.mxu1 %v4082_v5 }
 0x3f1   :  { %1766 = vmatprep.subr.bf16.mxu1 %v4222_v44 }
 0x3f2   :  { %3360 = vmatpush3.bf16.msra.mxu0 %v3575_v57 }
 0x3f3   :  { %3365 = vmatprep.subr.bf16.mxu0 %v3872_v1 }
 0x4a6   :  { %v1226_v58 = vpop.f32.mrb[12].mxu1  ;;  %v1267_v60 = vpop.f32.mrb[16].mxu0 }
 0x4a7   :  { %v1274_v61 = vrot.slane %v1226_v58, 6  ;;  %v1228_v63 = vpop.f32.mrb[13].mxu1  ;;  %v3343_v2 = vpop.f32.mrb[17].mxu0  ;;  %v1293_v25 = vadd.f32 %v1267_v60, %v4135_v3 }
 0x4a8   :  { %v1284_v4 = vrot.slane %v1228_v63, 6  ;;  %v1230_v5 = vpop.f32.mrb[14].mxu1  ;;  %v1270_v16 = vpop.f32.mrb[18].mxu0 }
 0x4a9   :  { %v1276_v17 = vadd.f32 %v1274_v61, %v4124_v28  ;;  %v1231_v18 = vpop.f32.mrb[15].mxu1  ;;  %v3344_v6 = vpop.f32.mrb[19].mxu0  ;;  %v1295_v26 = vrot.slane %v1293_v25, 6 }
 0x4aa   :  { %v1286_v19 = vadd.f32 %v1284_v4, %v4128_v32 }
 0x4ab   :  { %v3005_v20 = vmul.f32 -1.442695, %v1276_v17 }
 0x4ac   :  { %v3006_v21 = vmul.f32 -1.442695, %v1286_v19 }
 0x4ad   :  { %3660 = vpow2.f32 %v3005_v20 }
 0x4ae   :  { %3662 = vpow2.f32 %v3006_v21 }
 0x4b7   :  { %v3661_v22 = vpop.eup %3660 }
 0x4b8   :  { %v3663_v23 = vpop.eup %3662  ;;  %v1280_v39 = vadd.f32 1.0, %v3661_v22 }
 0x4b9   :  { %v1290_v24 = vadd.f32 1.0, %v3663_v23 }
 0x4ba   :  { %3664 = vrcp.f32 %v1280_v39 }
 0x4bb   :  { %3666 = vrcp.f32 %v1290_v24 }
 0x4c4   :  { %v3665_v30 = vpop.eup %3664 }
 0x4c5   :  { %v3667_v27 = vpop.eup %3666  ;;  %v1297_v33 = vmul.f32 %v3665_v30, %v1295_v26 }
 0x4c6   :  { %v1305_v34 = vmul.f32 %v3667_v27, %v1303_v31  ;;  %v1300_v36 = vsub.f32 1.0, %v3667_v27 }
 0x4c7   :  { %v1298_v35 = vadd.f32 %v1297_v33, %v4126_v29 }
 0x4c9   :  { %3668 = vtanh.f32 %v1298_v35 }
 0x4d3   :  { %v3669_v37 = vpop.eup %3668 }
 0x4d4   :  { %v1301_v38 = vmul.f32 %v3669_v37, %v1300_v36 }
 0x4d6   :  { %v4214_v40 = vadd.f32 %v1305_v34, %v1301_v38 }
 0x4d8   :  { %1307 = vst [vmem:[#allocation3] sm:$0x4] %v4214_v40  ;;  %v1314_v41 = vpack.c.bf16 %v4214_v40, %v4214_v40  ;;  %v1589_v26 = vrot.slane %v4214_v40, 7  ;;  %v3608_v40 = vld [vmem:[#allocation9 + $0x8] ss:$12 sps:$4 sm:$0xff]  }
 0x4da   :  { %v1348_v43 = vrot.slane %v1314_v41, 1 }
 0x4dc   :  { %1511 = vmatmul.mubr.bf16.vlgmr.msra.gmra.mrb[16].mxu1 %v1348_v43  ;;  %3362 = vmatmul.mubr.bf16.vlgmr.msra.gmra.mrb[20].mxu0 %v1348_v43 }
 0x4dd   :  { %1798 = vmatprep.mubr.bf16.mxu1 %v3871_v0  ;;  %3381 = vmatprep.mubr.msk.bf16.mxu0 %vm3873_vm0, %v3872_v1 }
 0x4de   :  { %1767 = vmatpush1.bf16.msra.mxu1 %v4224_v45  ;;  %3366 = vmatpush3.bf16.msra.mxu0 %v3579_v47  ;;  %v3609_v47 = vld [vmem:[#allocation9 + $0x20] ss:$12 sps:$4 sm:$0xff]  }
 0x4df   :  { %3367 = vmatprep.subr.bf16.mxu0 %v3872_v1  ;;  %1768 = vmatprep.subr.bf16.mxu1 %v4228_v48 }
 0x4e2   :  { %1769 = vmatpush1.bf16.msra.mxu1 %v4231_v50  ;;  %3368 = vmatpush3.bf16.msra.mxu0 %v3583_v53  ;;  %v3610_v53 = vld [vmem:[#allocation9 + $0x38] ss:$12 sps:$4 sm:$0xff]  }
 0x4e3   :  { %3369 = vmatprep.subr.bf16.mxu0 %v3872_v1  ;;  %1770 = vmatprep.subr.bf16.mxu1 %v4235_v56 }
 0x4e6   :  { %1771 = vmatpush1.bf16.msra.mxu1 %v4238_v59  ;;  %3370 = vmatpush3.bf16.msra.mxu0 %v3587_v62  ;;  %v3611_v62 = vld [vmem:[#allocation9 + $0x50] ss:$12 sps:$4 sm:$0xff]  }
 0x4e7   :  { %3371 = vmatprep.subr.bf16.mxu0 %v3872_v1  ;;  %1772 = vmatprep.subr.bf16.mxu1 %v4242_v7 }
 0x4ea   :  { %1773 = vmatpush1.bf16.msra.mxu1 %v4245_v8  ;;  %3372 = vmatpush3.bf16.msra.mxu0 %v3591_v9  ;;  %v3612_v9 = vld [vmem:[#allocation9 + $0x68] ss:$12 sps:$4 sm:$0xff]  }
 0x4eb   :  { %1774 = vmatprep.subr.bf16.mxu1 %v4248_v10  ;;  %3373 = vmatprep.subr.bf16.mxu0 %v3872_v1 }
 0x4ee   :  { %1775 = vmatpush1.bf16.msra.mxu1 %v4251_v11  ;;  %3374 = vmatpush3.bf16.msra.mxu0 %v3595_v12  ;;  %v3613_v12 = vld [vmem:[#allocation9 + $0x80] ss:$12 sps:$4 sm:$0xff]  }
 0x4ef   :  { %1776 = vmatprep.subr.bf16.mxu1 %v4255_v13  ;;  %3375 = vmatprep.subr.bf16.mxu0 %v3872_v1 }
 0x4f2   :  { %1777 = vmatpush1.bf16.msra.mxu1 %v4258_v14  ;;  %3376 = vmatpush3.bf16.msra.mxu0 %v3599_v15  ;;  %v3614_v15 = vld [vmem:[#allocation9 + $0x98] ss:$12 sps:$4 sm:$0xff]  }
 0x4f3   :  { %1778 = vmatprep.subr.bf16.mxu1 %v4262_v42  ;;  %3377 = vmatprep.subr.bf16.mxu0 %v3872_v1 }
 0x4f6   :  { %1779 = vmatpush1.bf16.msra.mxu1 %v4265_v46  ;;  %3378 = vmatpush3.bf16.msra.mxu0 %v3603_v49  ;;  %v3615_v49 = vld [vmem:[#allocation9 + $0xb0] ss:$12 sps:$4 sm:$0xff]  }
 0x4f7   :  { %1780 = vmatprep.subr.bf16.mxu1 %v4269_v51  ;;  %3379 = vmatprep.subr.bf16.mxu0 %v3872_v1 }
 0x4fa   :  { %1781 = vmatpush1.bf16.msra.mxu1 %v4272_v52  ;;  %3380 = vmatpush3.bf16.msra.mxu0 %v3607_v54 }
 0x4fb   :  { %2052 = vmatprep.subr.bf16.mxu1 %v4222_v44  ;;  %3385 = vmatprep.subr.bf16.mxu0 %v3872_v1 }
 0x5af   :  { %v1512_v55 = vpop.f32.mrb[16].mxu1  ;;  %v1553_v57 = vpop.f32.mrb[20].mxu0 }
 0x5b0   :  { %v1560_v58 = vrot.slane %v1512_v55, 5  ;;  %v1514_v60 = vpop.f32.mrb[17].mxu1  ;;  %v3363_v61 = vpop.f32.mrb[21].mxu0  ;;  %v1579_v39 = vadd.f32 %v1553_v57, %v4135_v3 }
 0x5b1   :  { %v1570_v63 = vrot.slane %v1514_v60, 5  ;;  %v1516_v2 = vpop.f32.mrb[18].mxu1  ;;  %v1556_v4 = vpop.f32.mrb[22].mxu0 }
 0x5b2   :  { %v1562_v5 = vadd.f32 %v1560_v58, %v4124_v28  ;;  %v1517_v16 = vpop.f32.mrb[19].mxu1  ;;  %v3364_v17 = vpop.f32.mrb[23].mxu0  ;;  %v1581_v24 = vrot.slane %v1579_v39, 5 }
 0x5b3   :  { %v1572_v18 = vadd.f32 %v1570_v63, %v4128_v32 }
 0x5b4   :  { %v3031_v6 = vmul.f32 -1.442695, %v1562_v5 }
 0x5b5   :  { %v3032_v19 = vmul.f32 -1.442695, %v1572_v18 }
 0x5b6   :  { %3670 = vpow2.f32 %v3031_v6 }
 0x5b7   :  { %3672 = vpow2.f32 %v3032_v19 }
 0x5c0   :  { %v3671_v20 = vpop.eup %3670 }
 0x5c1   :  { %v3673_v21 = vpop.eup %3672  ;;  %v1566_v22 = vadd.f32 1.0, %v3671_v20 }
 0x5c2   :  { %v1576_v23 = vadd.f32 1.0, %v3673_v21 }
 0x5c3   :  { %3674 = vrcp.f32 %v1566_v22 }
 0x5c4   :  { %3676 = vrcp.f32 %v1576_v23 }
 0x5cd   :  { %v3675_v25 = vpop.eup %3674 }
 0x5ce   :  { %v3677_v30 = vpop.eup %3676  ;;  %v1583_v31 = vmul.f32 %v3675_v25, %v1581_v24 }
 0x5cf   :  { %v1591_v27 = vmul.f32 %v3677_v30, %v1589_v26  ;;  %v1586_v34 = vsub.f32 1.0, %v3677_v30 }
 0x5d0   :  { %v1584_v33 = vadd.f32 %v1583_v31, %v4126_v29 }
 0x5d2   :  { %3678 = vtanh.f32 %v1584_v33 }
 0x5dc   :  { %v3679_v35 = vpop.eup %3678 }
 0x5dd   :  { %v1587_v36 = vmul.f32 %v3679_v35, %v1586_v34 }
 0x5df   :  { %v4284_v37 = vadd.f32 %v1591_v27, %v1587_v36 }
 0x5e1   :  { %1593 = vst [vmem:[#allocation3] sm:$0x8] %v4284_v37  ;;  %v1600_v38 = vpack.c.bf16 %v4284_v37, %v4284_v37  ;;  %v1877_v25 = vrot.slane %v4284_v37, 7  ;;  %v3616_v37 = vld [vmem:[#allocation9 + $0x8] ss:$12 sps:$4 sm:$0xff]  }
 0x5e3   :  { %v1634_v41 = vshrl.u32 %v1600_v38, 16 }
 0x5e5   :  { %v1636_v43 = vrot.slane %v1634_v41, 1 }
 0x5e7   :  { %1799 = vmatmul.mubr.bf16.vlgmr.msra.gmra.mrb[20].mxu1 %v1636_v43  ;;  %3382 = vmatmul.mubr.bf16.vlgmr.msra.gmra.mrb[24].mxu0 %v1636_v43  ;;  %v3617_v43 = vld [vmem:[#allocation9 + $0x20] ss:$12 sps:$4 sm:$0xff]  }
 0x5e8   :  { %2053 = vmatpush1.bf16.msra.mxu1 %v4224_v45  ;;  %2084 = vmatprep.mubr.bf16.mxu1 %v3871_v0 }
 0x5e9   :  { %2054 = vmatprep.subr.bf16.mxu1 %v4228_v48  ;;  %3401 = vmatprep.mubr.msk.bf16.mxu0 %vm3873_vm0, %v3872_v1 }
 0x5ea   :  { %3386 = vmatpush3.bf16.msra.mxu0 %v3608_v40  ;;  %v3618_v40 = vld [vmem:[#allocation9 + $0x38] ss:$12 sps:$4 sm:$0xff]  }
 0x5eb   :  { %3387 = vmatprep.subr.bf16.mxu0 %v3872_v1 }
 0x5ec   :  { %2055 = vmatpush1.bf16.msra.mxu1 %v4231_v50 }
 0x5ed   :  { %2056 = vmatprep.subr.bf16.mxu1 %v4235_v56 }
 0x5ee   :  { %3388 = vmatpush3.bf16.msra.mxu0 %v3609_v47  ;;  %v3619_v47 = vld [vmem:[#allocation9 + $0x50] ss:$12 sps:$4 sm:$0xff]  }
 0x5ef   :  { %3389 = vmatprep.subr.bf16.mxu0 %v3872_v1 }
 0x5f0   :  { %2057 = vmatpush1.bf16.msra.mxu1 %v4238_v59 }
 0x5f1   :  { %2058 = vmatprep.subr.bf16.mxu1 %v4242_v7 }
 0x5f2   :  { %3390 = vmatpush3.bf16.msra.mxu0 %v3610_v53  ;;  %v3620_v53 = vld [vmem:[#allocation9 + $0x68] ss:$12 sps:$4 sm:$0xff]  }
 0x5f3   :  { %3391 = vmatprep.subr.bf16.mxu0 %v3872_v1 }
 0x5f4   :  { %2059 = vmatpush1.bf16.msra.mxu1 %v4245_v8 }
 0x5f5   :  { %2060 = vmatprep.subr.bf16.mxu1 %v4248_v10 }
 0x5f6   :  { %3392 = vmatpush3.bf16.msra.mxu0 %v3611_v62  ;;  %v3621_v62 = vld [vmem:[#allocation9 + $0x80] ss:$12 sps:$4 sm:$0xff]  }
 0x5f7   :  { %3393 = vmatprep.subr.bf16.mxu0 %v3872_v1 }
 0x5f8   :  { %2061 = vmatpush1.bf16.msra.mxu1 %v4251_v11 }
 0x5f9   :  { %2062 = vmatprep.subr.bf16.mxu1 %v4255_v13 }
 0x5fa   :  { %3394 = vmatpush3.bf16.msra.mxu0 %v3612_v9  ;;  %v3623_v9 = vld [vmem:[#allocation9 + $0xb0] ss:$12 sps:$4 sm:$0xff]  }
 0x5fb   :  { %3395 = vmatprep.subr.bf16.mxu0 %v3872_v1 }
 0x5fc   :  { %2063 = vmatpush1.bf16.msra.mxu1 %v4258_v14 }
 0x5fd   :  { %2064 = vmatprep.subr.bf16.mxu1 %v4262_v42 }
 0x5fe   :  { %3396 = vmatpush3.bf16.msra.mxu0 %v3613_v12 }
 0x5ff   :  { %3397 = vmatprep.subr.bf16.mxu0 %v3872_v1 }
 0x600   :  { %2065 = vmatpush1.bf16.msra.mxu1 %v4265_v46 }
 0x601   :  { %2066 = vmatprep.subr.bf16.mxu1 %v4269_v51 }
 0x602   :  { %3398 = vmatpush3.bf16.msra.mxu0 %v3614_v15 }
 0x603   :  { %3399 = vmatprep.subr.bf16.mxu0 %v3872_v1 }
 0x604   :  { %2067 = vmatpush1.bf16.msra.mxu1 %v4272_v52 }
 0x605   :  { %2340 = vmatprep.subr.bf16.mxu1 %v4222_v44 }
 0x606   :  { %3400 = vmatpush3.bf16.msra.mxu0 %v3615_v49 }
 0x607   :  { %3405 = vmatprep.subr.bf16.mxu0 %v3872_v1 }
 0x6ba   :  { %v1800_v54 = vpop.f32.mrb[20].mxu1  ;;  %v1841_v55 = vpop.f32.mrb[24].mxu0 }
 0x6bb   :  { %v1848_v57 = vrot.slane %v1800_v54, 4  ;;  %v1802_v58 = vpop.f32.mrb[21].mxu1  ;;  %v3383_v60 = vpop.f32.mrb[25].mxu0  ;;  %v1867_v23 = vadd.f32 %v1841_v55, %v4135_v3 }
 0x6bc   :  { %v1858_v61 = vrot.slane %v1802_v58, 4  ;;  %v1804_v63 = vpop.f32.mrb[22].mxu1  ;;  %v1844_v2 = vpop.f32.mrb[26].mxu0 }
 0x6bd   :  { %v1850_v4 = vadd.f32 %v1848_v57, %v4124_v28  ;;  %v1805_v5 = vpop.f32.mrb[23].mxu1  ;;  %v3384_v16 = vpop.f32.mrb[27].mxu0  ;;  %v1869_v39 = vrot.slane %v1867_v23, 4 }
 0x6be   :  { %v1860_v17 = vadd.f32 %v1858_v61, %v4128_v32 }
 0x6bf   :  { %v3057_v18 = vmul.f32 -1.442695, %v1850_v4 }
 0x6c0   :  { %v3058_v6 = vmul.f32 -1.442695, %v1860_v17 }
 0x6c1   :  { %3680 = vpow2.f32 %v3057_v18 }
 0x6c2   :  { %3682 = vpow2.f32 %v3058_v6 }
 0x6cb   :  { %v3681_v19 = vpop.eup %3680 }
 0x6cc   :  { %v3683_v20 = vpop.eup %3682  ;;  %v1854_v21 = vadd.f32 1.0, %v3681_v19 }
 0x6cd   :  { %v1864_v22 = vadd.f32 1.0, %v3683_v20 }
 0x6ce   :  { %3684 = vrcp.f32 %v1854_v21 }
 0x6cf   :  { %3686 = vrcp.f32 %v1864_v22 }
 0x6d8   :  { %v3685_v24 = vpop.eup %3684 }
 0x6d9   :  { %v3687_v26 = vpop.eup %3686  ;;  %v1871_v30 = vmul.f32 %v3685_v24, %v1869_v39 }
 0x6da   :  { %v1879_v31 = vmul.f32 %v3687_v26, %v1877_v25  ;;  %v1874_v33 = vsub.f32 1.0, %v3687_v26 }
 0x6db   :  { %v1872_v27 = vadd.f32 %v1871_v30, %v4126_v29 }
 0x6dd   :  { %3688 = vtanh.f32 %v1872_v27 }
 0x6e7   :  { %v3689_v34 = vpop.eup %3688 }
 0x6e8   :  { %v1875_v35 = vmul.f32 %v3689_v34, %v1874_v33 }
 0x6ea   :  { %v4321_v36 = vadd.f32 %v1879_v31, %v1875_v35 }
 0x6ec   :  { %1881 = vst [vmem:[#allocation3] sm:$0x10] %v4321_v36  ;;  %v1888_v38 = vpack.c.bf16 %v4321_v36, %v4321_v36  ;;  %v2163_v23 = vrot.slane %v4321_v36, 7 }
 0x6ee   :  { %v1922_v41 = vrot.slane %v1888_v38, 2 }
 0x6f0   :  { %2085 = vmatmul.mubr.bf16.vlgmr.msra.gmra.mrb[24].mxu1 %v1922_v41  ;;  %3402 = vmatmul.mubr.bf16.vlgmr.msra.gmra.mrb[28].mxu0 %v1922_v41 }
 0x6f1   :  { %2341 = vmatpush1.bf16.msra.mxu1 %v4224_v45  ;;  %2372 = vmatprep.mubr.bf16.mxu1 %v3871_v0 }
 0x6f2   :  { %2342 = vmatprep.subr.bf16.mxu1 %v4228_v48  ;;  %3421 = vmatprep.mubr.msk.bf16.mxu0 %vm3873_vm0, %v3872_v1 }
 0x6f3   :  { %3406 = vmatpush3.bf16.msra.mxu0 %v3616_v37 }
 0x6f4   :  { %3407 = vmatprep.subr.bf16.mxu0 %v3872_v1 }
 0x6f5   :  { %2343 = vmatpush1.bf16.msra.mxu1 %v4231_v50 }
 0x6f6   :  { %2344 = vmatprep.subr.bf16.mxu1 %v4235_v56 }
 0x6f7   :  { %3408 = vmatpush3.bf16.msra.mxu0 %v3617_v43 }
 0x6f8   :  { %3409 = vmatprep.subr.bf16.mxu0 %v3872_v1 }
 0x6f9   :  { %2345 = vmatpush1.bf16.msra.mxu1 %v4238_v59 }
 0x6fa   :  { %2346 = vmatprep.subr.bf16.mxu1 %v4242_v7 }
 0x6fb   :  { %3410 = vmatpush3.bf16.msra.mxu0 %v3618_v40 }
 0x6fc   :  { %3411 = vmatprep.subr.bf16.mxu0 %v3872_v1 }
 0x6fd   :  { %2347 = vmatpush1.bf16.msra.mxu1 %v4245_v8 }
 0x6fe   :  { %2348 = vmatprep.subr.bf16.mxu1 %v4248_v10 }
 0x6ff   :  { %3412 = vmatpush3.bf16.msra.mxu0 %v3619_v47 }
 0x700   :  { %3413 = vmatprep.subr.bf16.mxu0 %v3872_v1 }
 0x701   :  { %2349 = vmatpush1.bf16.msra.mxu1 %v4251_v11 }
 0x702   :  { %2350 = vmatprep.subr.bf16.mxu1 %v4255_v13 }
 0x703   :  { %3414 = vmatpush3.bf16.msra.mxu0 %v3620_v53 }
 0x704   :  { %3415 = vmatprep.subr.bf16.mxu0 %v3872_v1 }
 0x705   :  { %2351 = vmatpush1.bf16.msra.mxu1 %v4258_v14 }
 0x706   :  { %2352 = vmatprep.subr.bf16.mxu1 %v4262_v42 }
 0x707   :  { %3416 = vmatpush3.bf16.msra.mxu0 %v3621_v62 }
 0x708   :  { %3417 = vmatprep.subr.bf16.mxu0 %v3872_v1 }
 0x709   :  { %2353 = vmatpush1.bf16.msra.mxu1 %v4265_v46 }
 0x70a   :  { %2354 = vmatprep.subr.bf16.mxu1 %v4269_v51 }
 0x70d   :  { %2355 = vmatpush1.bf16.msra.mxu1 %v4272_v52 }
 0x70e   :  { %2626 = vmatprep.subr.bf16.mxu1 %v4222_v44  ;;  %v3622_v44 = vld [vmem:[#allocation9 + $0x98] ss:$12 sps:$4 sm:$0xff]  }
 0x70f   :  { %3418 = vmatpush3.bf16.msra.mxu0 %v3622_v44 }
 0x710   :  { %3419 = vmatprep.subr.bf16.mxu0 %v3872_v1 }
 0x713   :  { %3420 = vmatpush3.bf16.msra.mxu0 %v3623_v9 }
 0x714   :  { %3425 = vmatprep.subr.bf16.mxu0 %v3872_v1 }
 0x7c3   :  { %v2086_v12 = vpop.f32.mrb[24].mxu1  ;;  %v2127_v15 = vpop.f32.mrb[28].mxu0 }
 0x7c4   :  { %v2134_v49 = vrot.slane %v2086_v12, 3  ;;  %v2088_v54 = vpop.f32.mrb[25].mxu1  ;;  %v3403_v55 = vpop.f32.mrb[29].mxu0  ;;  %v2153_v20 = vadd.f32 %v2127_v15, %v4135_v3 }
 0x7c5   :  { %v2144_v57 = vrot.slane %v2088_v54, 3  ;;  %v2090_v58 = vpop.f32.mrb[26].mxu1  ;;  %v2130_v60 = vpop.f32.mrb[30].mxu0 }
 0x7c6   :  { %v2136_v61 = vadd.f32 %v2134_v49, %v4124_v28  ;;  %v2091_v63 = vpop.f32.mrb[27].mxu1  ;;  %v3404_v2 = vpop.f32.mrb[31].mxu0  ;;  %v2155_v21 = vrot.slane %v2153_v20, 3  ;;  %v3637_v20 = vld [vmem:[#allocation10 + $0x28] sm:$0xff]  }
 0x7c7   :  { %v2146_v4 = vadd.f32 %v2144_v57, %v4128_v32 }
 0x7c8   :  { %v3083_v5 = vmul.f32 -1.442695, %v2136_v61 }
 0x7c9   :  { %v3084_v16 = vmul.f32 -1.442695, %v2146_v4 }
 0x7ca   :  { %3690 = vpow2.f32 %v3083_v5 }
 0x7cb   :  { %3692 = vpow2.f32 %v3084_v16 }
 0x7d4   :  { %v3691_v17 = vpop.eup %3690 }
 0x7d5   :  { %v3693_v18 = vpop.eup %3692  ;;  %v2140_v6 = vadd.f32 1.0, %v3691_v17  ;;  %v3633_v17 = vld [vmem:[#allocation10 + $0x8] sm:$0xff]  }
 0x7d6   :  { %v2150_v19 = vadd.f32 1.0, %v3693_v18  ;;  %v3634_v18 = vld [vmem:[#allocation10 + $0x10] sm:$0xff]  }
 0x7d7   :  { %3694 = vrcp.f32 %v2140_v6  ;;  %v3635_v6 = vld [vmem:[#allocation10 + $0x18] sm:$0xff]  }
 0x7d8   :  { %3696 = vrcp.f32 %v2150_v19  ;;  %v3636_v19 = vld [vmem:[#allocation10 + $0x20] sm:$0xff]  }
 0x7e1   :  { %v3695_v22 = vpop.eup %3694 }
 0x7e2   :  { %v3697_v39 = vpop.eup %3696  ;;  %v2157_v24 = vmul.f32 %v3695_v22, %v2155_v21  ;;  %v3638_v21 = vld [vmem:[#allocation10 + $0x30] sm:$0xff]   ;;  %v3639_v22 = vld [vmem:[#allocation10 + $0x38] sm:$0xff]  }
 0x7e3   :  { %v2165_v25 = vmul.f32 %v3697_v39, %v2163_v23  ;;  %v2160_v30 = vsub.f32 1.0, %v3697_v39 }
 0x7e4   :  { %v2158_v26 = vadd.f32 %v2157_v24, %v4126_v29 }
 0x7e6   :  { %3698 = vtanh.f32 %v2158_v26 }
 0x7f0   :  { %v3699_v31 = vpop.eup %3698 }
 0x7f1   :  { %v2161_v27 = vmul.f32 %v3699_v31, %v2160_v30 }
 0x7f3   :  { %v4358_v33 = vadd.f32 %v2165_v25, %v2161_v27 }
 0x7f5   :  { %2167 = vst [vmem:[#allocation3] sm:$0x20] %v4358_v33  ;;  %v2174_v34 = vpack.c.bf16 %v4358_v33, %v4358_v33  ;;  %v2451_v54 = vrot.slane %v4358_v33, 7 }
 0x7f7   :  { %v2208_v35 = vshrl.u32 %v2174_v34, 16 }
 0x7f9   :  { %v2210_v38 = vrot.slane %v2208_v35, 2 }
 0x7fb   :  { %2373 = vmatmul.mubr.bf16.vlgmr.msra.gmra.mrb[28].mxu1 %v2210_v38  ;;  %3422 = vmatmul.mubr.bf16.vlgmr.msra.gmra.mrb[32].mxu0 %v2210_v38 }
 0x7fc   :  { %2627 = vmatpush1.bf16.msra.mxu1 %v4224_v45  ;;  %2658 = vmatprep.mubr.bf16.mxu1 %v3871_v0  ;;  %v3624_v0 = vld [vmem:[#allocation9 + $0x8] ss:$12 sps:$4 sm:$0xff]   ;;  %v3625_v45 = vld [vmem:[#allocation9 + $0x20] ss:$12 sps:$4 sm:$0xff]  }
 0x7fd   :  { %2628 = vmatprep.subr.bf16.mxu1 %v4228_v48  ;;  %3441 = vmatprep.mubr.msk.bf16.mxu0 %vm3873_vm0, %v3872_v1  ;;  %v3626_v48 = vld [vmem:[#allocation9 + $0x38] ss:$12 sps:$4 sm:$0xff]  }
 0x7fe   :  { %3426 = vmatpush3.bf16.msra.mxu0 %v3624_v0 }
 0x7ff   :  { %3427 = vmatprep.subr.bf16.mxu0 %v3872_v1 }
 0x800   :  { %2629 = vmatpush1.bf16.msra.mxu1 %v4231_v50  ;;  %v3627_v50 = vld [vmem:[#allocation9 + $0x50] ss:$12 sps:$4 sm:$0xff]  }
 0x801   :  { %2630 = vmatprep.subr.bf16.mxu1 %v4235_v56  ;;  %v3628_v56 = vld [vmem:[#allocation9 + $0x68] ss:$12 sps:$4 sm:$0xff]  }
 0x802   :  { %3428 = vmatpush3.bf16.msra.mxu0 %v3625_v45 }
 0x803   :  { %3429 = vmatprep.subr.bf16.mxu0 %v3872_v1 }
 0x804   :  { %2631 = vmatpush1.bf16.msra.mxu1 %v4238_v59  ;;  %v3629_v59 = vld [vmem:[#allocation9 + $0x80] ss:$12 sps:$4 sm:$0xff]  }
 0x805   :  { %2632 = vmatprep.subr.bf16.mxu1 %v4242_v7  ;;  %v3630_v7 = vld [vmem:[#allocation9 + $0x98] ss:$12 sps:$4 sm:$0xff]  }
 0x806   :  { %3430 = vmatpush3.bf16.msra.mxu0 %v3626_v48 }
 0x807   :  { %3431 = vmatprep.subr.bf16.mxu0 %v3872_v1 }
 0x808   :  { %2633 = vmatpush1.bf16.msra.mxu1 %v4245_v8  ;;  %v3631_v8 = vld [vmem:[#allocation9 + $0xb0] ss:$12 sps:$4 sm:$0xff]  }
 0x809   :  { %2634 = vmatprep.subr.bf16.mxu1 %v4248_v10 }
 0x80a   :  { %3432 = vmatpush3.bf16.msra.mxu0 %v3627_v50 }
 0x80b   :  { %3433 = vmatprep.subr.bf16.mxu0 %v3872_v1 }
 0x80c   :  { %2635 = vmatpush1.bf16.msra.mxu1 %v4251_v11 }
 0x80d   :  { %2636 = vmatprep.subr.bf16.mxu1 %v4255_v13 }
 0x80e   :  { %3434 = vmatpush3.bf16.msra.mxu0 %v3628_v56 }
 0x80f   :  { %3435 = vmatprep.subr.bf16.mxu0 %v3872_v1 }
 0x810   :  { %2637 = vmatpush1.bf16.msra.mxu1 %v4258_v14 }
 0x811   :  { %2638 = vmatprep.subr.bf16.mxu1 %v4262_v42 }
 0x812   :  { %3436 = vmatpush3.bf16.msra.mxu0 %v3629_v59  ;;  %v3720_v59 = vld [vmem:[%s4442_s6] sm:$0x1]  ;;  %s3875_s6 = smov [#allocation13]  }
 0x813   :  { %3437 = vmatprep.subr.bf16.mxu0 %v3872_v1  ;;  %s2879_s30 = sshll.u32 %s3875_s6, 4  ;;  %s2880_s30 = int_to_ptr.vmem [resolvable:$true] %s2879_s30 }
 0x814   :  { %2639 = vmatpush1.bf16.msra.mxu1 %v4265_v46  ;;  %s3809_s11 = scalar_lea.vmem %s2880_s30, 16  ;;  %s3813_s12 = scalar_lea.vmem %s2880_s30, 32 }
 0x815   :  { %2640 = vmatprep.subr.bf16.mxu1 %v4269_v51  ;;  %p3810_p4 = scmp.ne.s32.totalorder %s2880_s30, %s3809_s11  ;;  %p3814_p5 = scmp.lt.s32.totalorder %s2880_s30, %s2880_s30 }
 0x816   :  { %3438 = vmatpush3.bf16.msra.mxu0 %v3630_v7  ;;  %p3815_p6 = scmp.lt.s32.totalorder %s3813_s12, %s3809_s11 }
 0x817   :  { %3439 = vmatprep.subr.bf16.mxu0 %v3872_v1 }
 0x818   :  { %2641 = vmatpush1.bf16.msra.mxu1 %v4272_v52  ;;  %p3816_p7 = por %p3815_p6, %p3814_p5 }
 0x819   :  { %3445 = vmatprep.subr.bf16.mxu1 %v3872_v1 }
 0x81a   :  { %3440 = vmatpush3.bf16.msra.mxu0 %v3631_v8  ;;  %p3817_p8 = pnand %p3816_p7, %p3810_p4 }
 0x8ce   :  { %v2374_v10 = vpop.f32.mrb[28].mxu1  ;;  %v2415_v11 = vpop.f32.mrb[32].mxu0 }
 0x8cf   :  { %v2422_v13 = vrot.slane %v2374_v10, 2  ;;  %v2376_v14 = vpop.f32.mrb[29].mxu1  ;;  %v3423_v42 = vpop.f32.mrb[33].mxu0  ;;  %v2441_v12 = vadd.f32 %v2415_v11, %v4135_v3  ;;  %v3632_v3 = vld [vmem:[#allocation10] sm:$0xff]  }
 0x8d0   :  { %v2432_v46 = vrot.slane %v2376_v14, 2  ;;  %v2378_v51 = vpop.f32.mrb[30].mxu1  ;;  %v2418_v52 = vpop.f32.mrb[34].mxu0 }
 0x8d1   :  { %v2424_v36 = vadd.f32 %v2422_v13, %v4124_v28  ;;  %v2379_v41 = vpop.f32.mrb[31].mxu1  ;;  %v3424_v37 = vpop.f32.mrb[35].mxu0  ;;  %v2443_v15 = vrot.slane %v2441_v12, 2 }
 0x8d2   :  { %v2434_v43 = vadd.f32 %v2432_v46, %v4128_v32 }
 0x8d3   :  { %v3109_v40 = vmul.f32 -1.442695, %v2424_v36 }
 0x8d4   :  { %v3110_v47 = vmul.f32 -1.442695, %v2434_v43 }
 0x8d5   :  { %3700 = vpow2.f32 %v3109_v40 }
 0x8d6   :  { %3702 = vpow2.f32 %v3110_v47 }
 0x8df   :  { %v3701_v53 = vpop.eup %3700 }
 0x8e0   :  { %v3703_v62 = vpop.eup %3702  ;;  %v2428_v44 = vadd.f32 1.0, %v3701_v53 }
 0x8e1   :  { %v2438_v9 = vadd.f32 1.0, %v3703_v62 }
 0x8e2   :  { %3704 = vrcp.f32 %v2428_v44 }
 0x8e3   :  { %3706 = vrcp.f32 %v2438_v9 }
 0x8ec   :  { %v3705_v49 = vpop.eup %3704 }
 0x8ed   :  { %v3707_v55 = vpop.eup %3706  ;;  %v2445_v57 = vmul.f32 %v3705_v49, %v2443_v15 }
 0x8ee   :  { %v2453_v58 = vmul.f32 %v3707_v55, %v2451_v54  ;;  %v2448_v61 = vsub.f32 1.0, %v3707_v55 }
 0x8ef   :  { %v2446_v60 = vadd.f32 %v2445_v57, %v4126_v29 }
 0x8f1   :  { %3708 = vtanh.f32 %v2446_v60 }
 0x8fb   :  { %v3709_v63 = vpop.eup %3708 }
 0x8fc   :  { %v2449_v2 = vmul.f32 %v3709_v63, %v2448_v61 }
 0x8fe   :  { %v2454_v4 = vadd.f32 %v2453_v58, %v2449_v2 }
 0x900   :  { %2455 = vst [vmem:[#allocation3] sm:$0x40] %v2454_v4  ;;  %v2462_v5 = vpack.c.bf16 %v2454_v4, %v2454_v4  ;;  %v2737_v10 = vrot.slane %v2454_v4, 7 }
 0x902   :  { %v2496_v16 = vrot.slane %v2462_v5, 3 }
 0x904   :  { %2659 = vmatmul.mubr.bf16.vlgmr.msra.gmra.mrb[32].mxu1 %v2496_v16  ;;  %3442 = vmatmul.mubr.bf16.vlgmr.msra.gmra.mrb[36].mxu0 %v2496_v16 }
 0x905   :  { %3461 = vmatprep.mubr.msk.bf16.mxu1 %vm3873_vm0, %v3872_v1  ;;  %3446 = vmatpush3.bf16.msra.mxu1 %v3632_v3 }
 0x906   :  { %3447 = vmatprep.subr.bf16.mxu1 %v3872_v1 }
 0x909   :  { %3448 = vmatpush3.bf16.msra.mxu1 %v3633_v17 }
 0x90a   :  { %3449 = vmatprep.subr.bf16.mxu1 %v3872_v1 }
 0x90d   :  { %3450 = vmatpush3.bf16.msra.mxu1 %v3634_v18 }
 0x90e   :  { %3451 = vmatprep.subr.bf16.mxu1 %v3872_v1 }
 0x911   :  { %3452 = vmatpush3.bf16.msra.mxu1 %v3635_v6 }
 0x912   :  { %3453 = vmatprep.subr.bf16.mxu1 %v3872_v1 }
 0x915   :  { %3454 = vmatpush3.bf16.msra.mxu1 %v3636_v19 }
 0x916   :  { %3455 = vmatprep.subr.bf16.mxu1 %v3872_v1 }
 0x919   :  { %3456 = vmatpush3.bf16.msra.mxu1 %v3637_v20 }
 0x91a   :  { %3457 = vmatprep.subr.bf16.mxu1 %v3872_v1 }
 0x91d   :  { %3458 = vmatpush3.bf16.msra.mxu1 %v3638_v21 }
 0x91e   :  { %3459 = vmatprep.subr.bf16.mxu1 %v3872_v1 }
 0x921   :  { %3460 = vmatpush3.bf16.msra.mxu1 %v3639_v22 }
 0x9d7   :  { %v2660_v23 = vpop.f32.mrb[32].mxu1  ;;  %v2701_v39 = vpop.f32.mrb[36].mxu0 }
 0x9d8   :  { %v2708_v24 = vrot.slane %v2660_v23, 1  ;;  %v2662_v25 = vpop.f32.mrb[33].mxu1  ;;  %v3443_v26 = vpop.f32.mrb[37].mxu0  ;;  %v2727_v7 = vadd.f32 %v3720_v59, %v2701_v39 }
 0x9d9   :  { %v2718_v30 = vrot.slane %v2662_v25, 1  ;;  %v2664_v31 = vpop.f32.mrb[34].mxu1  ;;  %v2704_v27 = vpop.f32.mrb[38].mxu0 }
 0x9da   :  { %v2710_v33 = vadd.f32 %v2708_v24, %v4124_v28  ;;  %v2665_v34 = vpop.f32.mrb[35].mxu1  ;;  %v3444_v35 = vpop.f32.mrb[39].mxu0  ;;  %v2729_v28 = vrot.slane %v2727_v7, 1 }
 0x9db   :  { %v2720_v38 = vadd.f32 %v2718_v30, %v4128_v32 }
 0x9dc   :  { %v3135_v0 = vmul.f32 -1.442695, %v2710_v33 }
 0x9dd   :  { %v3136_v45 = vmul.f32 -1.442695, %v2720_v38 }
 0x9de   :  { %3710 = vpow2.f32 %v3135_v0 }
 0x9df   :  { %3712 = vpow2.f32 %v3136_v45 }
 0x9e8   :  { %v3711_v1 = vpop.eup %3710 }
 0x9e9   :  { %v3713_v48 = vpop.eup %3712  ;;  %v2714_v50 = vadd.f32 1.0, %v3711_v1 }
 0x9ea   :  { %v2724_v56 = vadd.f32 1.0, %v3713_v48 }
 0x9eb   :  { %3714 = vrcp.f32 %v2714_v50 }
 0x9ec   :  { %3716 = vrcp.f32 %v2724_v56 }
 0x9f5   :  { %v3715_v8 = vpop.eup %3714 }
 0x9f6   :  { %v3717_v11 = vpop.eup %3716  ;;  %v2731_v32 = vmul.f32 %v3715_v8, %v2729_v28 }
 0x9f7   :  { %v2739_v13 = vmul.f32 %v3717_v11, %v2737_v10  ;;  %v2734_v42 = vsub.f32 1.0, %v3717_v11 }
 0x9f8   :  { %v2732_v14 = vadd.f32 %v2731_v32, %v4126_v29 }
 0x9fa   :  { %3718 = vtanh.f32 %v2732_v14 }
 0xa04   :  { %v3719_v46 = vpop.eup %3718 }
 0xa05   :  { %v2735_v51 = vmul.f32 %v3719_v46, %v2734_v42 }
 0xa07   :  { %v2740_v52 = vadd.f32 %v2739_v13, %v2735_v51 }
 0xa09   :  { %2741 = vst [vmem:[#allocation3] sm:$0x80] %v2740_v52  ;;  %2748 = vst [vmem:[#allocation2 - $0x7] sm:$0x80] %v2740_v52 }
 0xa10   :  { %v2749_v36 = vld [vmem:[#allocation3] sm:$0xff] }
 0xa11   :  { %v2750_v41 = vpack.c.bf16 %v2749_v36, %v2749_v36 }
 0xa13   :  { %3462 = vmatmul.mubr.bf16.vlgmr.msra.gmra.mrb[36].mxu1 %v2750_v41 }
 0xa14   :  { %3820 = shalt.err (!%p3817_p8)
}
 0xa15   :  { %s3821_s28 = scalar_lea.hbm %s4446_s10, 16 }
 0xa16   :  { %p3822_p9 = scmp.ne.s32.totalorder %s4446_s10, %s3821_s28  ;;  %p3825_p10 = scmp.lt.u32.totalorder %s3821_s28, %s4446_s10 }
 0xa18   :  { %p3827_p11 = pnand %p3825_p10, %p3822_p9 }
 0xa1a   :  { %3830 = shalt.err (!%p3827_p11)
}
 0xa1b   :  { %2882 = dma.vmem_to_hbm [thread:$0]  %s2880_s30, 16, %s4446_s10, [#allocation14]   ;;  %v3137_v29 = vld [vmem:[%s4444_s8] ss:$0 sm:$0xff] }
 0xa1c   :  { %s3876_s27 = smov [#allocation12]  }
 0xa1d   :  { %s2869_s5 = sshll.u32 %s3876_s27, 4  ;;  %s2870_s5 = int_to_ptr.vmem [resolvable:$true] %s2869_s5 }
 0xa1e   :  { %s3831_s23 = scalar_lea.vmem %s2870_s5, 128  ;;  %p3836_p13 = scmp.lt.s32.totalorder %s2870_s5, %s2870_s5 }
 0xa1f   :  { %p3832_p12 = scmp.ne.s32.totalorder %s2870_s5, %s3831_s23  ;;  %p3837_p0 = scmp.lt.s32.totalorder %s3831_s23, %s3831_s23 }
 0xa21   :  { %p3838_p1 = por %p3837_p0, %p3836_p13 }
 0xa23   :  { %p3839_p2 = pnand %p3838_p1, %p3832_p12 }
 0xae6   :  { %v2856_v37 = vpop.f32.mrb[36].mxu1 }
 0xae7   :  { %v2857_v43 = vadd.f32 %v3137_v29, %v2856_v37  ;;  %v3463_v40 = vpop.f32.mrb[37].mxu1 }
 0xae8   :  { %v2859_v47 = vpop.f32.mrb[38].mxu1 }
 0xae9   :  { %2862 = vst [vmem:[#allocation12] sm:$0xff] %v2857_v43  ;;  %v3464_v53 = vpop.f32.mrb[39].mxu1 }
 0xaea   :  { %3842 = shalt.err (!%p3839_p2)
}
 0xaeb   :  { %s3843_s8 = scalar_lea.hbm %s4445_s9, 128 }
 0xaec   :  { %p3844_p3 = scmp.ne.s32.totalorder %s4445_s9, %s3843_s8  ;;  %p3847_p4 = scmp.lt.u32.totalorder %s3843_s8, %s4445_s9 }
 0xaee   :  { %p3849_p5 = pnand %p3847_p4, %p3844_p3 }
 0xaf0   :  { %3852 = shalt.err (!%p3849_p5)
}
 0xaf1   :  { %2872 = dma.vmem_to_hbm [thread:$0]  %s2870_s5, 128, %s4445_s9, [#allocation6]  }
 0xaf2   :  { %3859 = dma.done.wait [#allocation6], 128  }
 0xaf3   :  { %3860 = vsyncadd [#allocation6], 4294967168 }
 0xaf4   :  { %3861 = dma.done.wait [#allocation14], 16  }
 0xaf5   :  { %3862 = vsyncadd [#allocation14], 4294967280 }
 0xaf6   :  { %2889 = vsyncpa [#allocation5], 1 }
 0xaf7   :  { %2890 = vsyncpa [#allocation8], 1 }
 0xaf8   :  { %2891 = vsyncpa [#allocation11], 1 }
 0xaf9   :  { %2892 = vsyncpa [#allocation6], 1 }
 0xafa   :  { %2893 = vsyncpa [#allocation14], 1 }

</bundles_post_ra>
